<compile_context>
chip_gen: v5e
topology: v5e:2x2
jax: 0.10.0
libtpu: 0.0.40
codegen_flags: <defaults>
</compile_context>

<pallas_src>
import functools
import math

import jax
import jax.numpy as jnp
from jax import lax
from jax.experimental import pallas as pl
from jax.experimental.pallas import tpu as pltpu


def _pearson_kernel(o_ref, t_ref, part_ref, acc_ref, *, eps, tp, G, n_packed,
                    steps_per_core, use_mxu, mask_rows):
    """One grid step handles a (TM, L) tile of packed rows (L = G * tp).

    o_ref, t_ref : (TM, L) VMEM tiles (native dtype; cast to f32 in VMEM).
    part_ref     : (1, 1) per-core partial sum of per-row correlations.
    acc_ref      : (1, 1) f32 VMEM scratch, resident across the inner grid axis.
    """
    s = pl.program_id(1)

    @pl.when(s == 0)
    def _():
        acc_ref[...] = jnp.zeros_like(acc_ref)

    o = o_ref[...].astype(jnp.float32)
    t = t_ref[...].astype(jnp.float32)
    tm, L = o.shape

    if G > 1 and use_mxu:
        # Segmented reductions over the G original rows packed into the lane axis,
        # expressed as one-hot matmuls on the (otherwise idle) MXU.
        #   seg[j, c]  = 1 iff lane j belongs to group c   (columns c >= G are 0)
        #   segT[c, j] = seg[j, c]   (broadcast group values back over lanes)
        j0 = lax.broadcasted_iota(jnp.int32, (L, 128), 0)
        c0 = lax.broadcasted_iota(jnp.int32, (L, 128), 1)
        seg = ((j0 >= c0 * tp) & (j0 < (c0 + 1) * tp)).astype(jnp.float32)
        c1 = lax.broadcasted_iota(jnp.int32, (128, L), 0)
        j1 = lax.broadcasted_iota(jnp.int32, (128, L), 1)
        segT = ((j1 >= c1 * tp) & (j1 < (c1 + 1) * tp)).astype(jnp.float32)

        dotf = functools.partial(jnp.dot, precision=lax.Precision.HIGHEST,
                                 preferred_element_type=jnp.float32)
        inv_tp = jnp.float32(1.0 / tp)
        mean_o = dotf(o, seg) * inv_tp          # (TM, 128): lane c<G = mean of group c
        mean_t = dotf(t, seg) * inv_tp
        oc = o - dotf(mean_o, segT)             # two-pass centering (numerically safe)
        tc = t - dotf(mean_t, segT)
        num = dotf(oc * tc, seg)                # (TM, 128); lanes >= G are exactly 0
        ss_o = dotf(oc * oc, seg)
        ss_t = dotf(tc * tc, seg)
        denom = jnp.sqrt(ss_o) * jnp.sqrt(ss_t) + eps
        # Lanes >= G give 0 / (0 + eps) = 0, so they never perturb the sum.
        corrs = num * pl.reciprocal(denom, approx=False)             # (TM, 128)
    elif G > 1:
        # Tiny-problem fallback (< 8 packed rows total): unrolled per-group slices,
        # exact f32 VPU/XLU arithmetic, no MXU.
        corrs = jnp.zeros((tm, 1), jnp.float32)
        for g in range(G):
            og = o[:, g * tp:(g + 1) * tp]
            tg = t[:, g * tp:(g + 1) * tp]
            og = og - jnp.mean(og, axis=-1, keepdims=True)
            tg = tg - jnp.mean(tg, axis=-1, keepdims=True)
            num_g = jnp.sum(og * tg, axis=-1, keepdims=True)
            den_g = (jnp.sqrt(jnp.sum(og * og, axis=-1, keepdims=True)) *
                     jnp.sqrt(jnp.sum(tg * tg, axis=-1, keepdims=True)) + eps)
            corrs = corrs + num_g / den_g                             # (TM, 1)
    else:
        # One original row per packed row (tp >= 128, or no clean packing factor).
        oc = o - jnp.mean(o, axis=-1, keepdims=True)
        tc = t - jnp.mean(t, axis=-1, keepdims=True)
        num = jnp.sum(oc * tc, axis=-1, keepdims=True)
        denom = (jnp.sqrt(jnp.sum(oc * oc, axis=-1, keepdims=True)) *
                 jnp.sqrt(jnp.sum(tc * tc, axis=-1, keepdims=True)) + eps)
        corrs = num * pl.reciprocal(denom, approx=False)              # (TM, 1)

    if mask_rows:
        # Mask packed rows past the true row count (tail tile / idle megacore steps).
        row_base = (pl.program_id(0) * steps_per_core + s) * tm
        row_ids = row_base + lax.broadcasted_iota(jnp.int32, (tm, 1), 0)
        corrs = jnp.where(row_ids < n_packed, corrs, 0.0)

    acc_ref[...] += jnp.sum(jnp.sum(corrs, axis=1, keepdims=True),
                            axis=0, keepdims=True)

    @pl.when(s == steps_per_core - 1)
    def _():
        part_ref[...] = acc_ref[...]


def pearson_correlation_loss(out, y, eps=1e-6, *, block_bytes=1 << 20):
    """Pallas TPU equivalent of PearsonCorrelationLoss.forward(out, y, eps)."""
    assert out.shape == y.shape, (out.shape, y.shape)
    tp = int(out.shape[-1])
    n_rows = max(1, int(out.size) // tp)

    # ---- lane packing: fold G consecutive rows into the 128-lane axis ---------
    G = 1
    if tp < 128:
        G = max(1, math.gcd(128 // tp, n_rows))
    L = G * tp
    n_packed = n_rows // G                  # exact: G divides n_rows

    o2 = jnp.reshape(out, (n_packed, L))    # metadata-only reshape, native dtype
    y2 = jnp.reshape(y, (n_packed, L))

    # ---- row-tile size from a per-block VMEM byte budget -----------------------
    itemsize = jnp.dtype(out.dtype).itemsize
    lane_bytes = (((L + 127) // 128) * 128) * itemsize   # lane-padded row footprint
    tm = max(8, (int(block_bytes) // lane_bytes // 8) * 8)
    if n_packed <= tm:
        tm = n_packed                       # single tile: full row extent
    steps_total = -(-n_packed // tm)        # cdiv

    # ---- megacore-friendly grid: (core split, row tiles per core) --------------
    nc = 2 if steps_total >= 2 else 1       # v7x has 2 TensorCores; harmless elsewhere
    steps_per_core = -(-steps_total // nc)
    last_block = steps_total - 1
    mask_rows = (nc * steps_per_core * tm != n_packed)   # tail tile or idle steps

    def row_block(c, s):                    # clamp idle trailing steps in-bounds
        return (jnp.minimum(c * steps_per_core + s, last_block), 0)

    kernel = functools.partial(
        _pearson_kernel, eps=float(eps), tp=tp, G=G, n_packed=n_packed,
        steps_per_core=steps_per_core, use_mxu=(tm >= 8), mask_rows=mask_rows)

    partials = pl.pallas_call(
        kernel,
        out_shape=jax.ShapeDtypeStruct((nc, 1), jnp.float32),
        grid_spec=pltpu.PrefetchScalarGridSpec(
            num_scalar_prefetch=0,
            grid=(nc, steps_per_core),
            in_specs=[
                pl.BlockSpec((tm, L), row_block),
                pl.BlockSpec((tm, L), row_block),
            ],
            out_specs=pl.BlockSpec((1, 1), lambda c, s: (c, 0)),
            scratch_shapes=[pltpu.VMEM((1, 1), jnp.float32)],
        ),
        compiler_params=pltpu.CompilerParams(
            dimension_semantics=("parallel", "arbitrary"),
            vmem_limit_bytes=32 * 1024 * 1024,
        ),
    )(o2, y2)

    corr_mean = jnp.sum(partials) / jnp.float32(n_rows)
    # TODO(synk): the torch module raises on NaN(corr); replicate with a host-side
    # check on the returned scalar outside of jit if required.
    # TODO(synk): for extremely long tp (one row tile >> VMEM budget), switch to a
    # moment-form reduction with tp as an extra 'arbitrary' grid axis.
    return 1.0 - corr_mean


def _reference_loss(out, y, eps=1e-6):
    tp = out.shape[-1]
    o = jnp.reshape(out, (-1, tp)).astype(jnp.float32)
    t = jnp.reshape(y, (-1, tp)).astype(jnp.float32)
    o = o - jnp.mean(o, axis=-1, keepdims=True)
    t = t - jnp.mean(t, axis=-1, keepdims=True)
    corrs = jnp.sum(o * t, axis=-1) / (
        jnp.linalg.norm(o, axis=-1) * jnp.linalg.norm(t, axis=-1) + eps)
    return 1.0 - jnp.mean(corrs)


if __name__ == "__main__":
    key = jax.random.PRNGKey(0)
    k1, k2, k3, k4 = jax.random.split(key, 4)

    # Small module-shaped demo: (samples=2, chnl=4, tp=16).
    samples, chnl, tp = 2, 4, 16
    out = jax.random.normal(k1, (samples, chnl, tp), dtype=jnp.float32)
    y = jax.random.normal(k2, (samples, chnl, tp), dtype=jnp.float32)
    loss = jax.block_until_ready(pearson_correlation_loss(out, y))
    ref = _reference_loss(out, y)
    assert jnp.allclose(loss, ref, atol=1e-4, rtol=1e-4), (loss, ref)

    # Larger case: exercises lane packing (G=8), the MXU segmented-reduction path,
    # multi-tile grid, the 2-way core split and tail-row masking.
    # (Looser tolerance: the segmented reductions run as multi-pass f32 matmuls.)
    s2, c2, t2 = 2500, 8, 16
    out2 = jax.random.normal(k3, (s2, c2, t2), dtype=jnp.float32)
    y2 = 0.5 * out2 + 0.5 * jax.random.normal(k4, (s2, c2, t2), dtype=jnp.float32)
    loss2 = jax.block_until_ready(pearson_correlation_loss(out2, y2))
    ref2 = _reference_loss(out2, y2)
    assert jnp.allclose(loss2, ref2, atol=2e-2, rtol=2e-2), (loss2, ref2)

    print("KERNEL_OK")
</pallas_src>

<mosaic_0001>
module attributes {stable_mosaic.version = 11 : i64} {
  func.func @_pearson_kernel(%arg0: i32, %arg1: i32, %arg2: memref<1x128xf32, #tpu.memory_space<vmem>>, %arg3: memref<1x128xf32, #tpu.memory_space<vmem>>, %arg4: memref<1x1xf32, #tpu.memory_space<vmem>>, %arg5: memref<1x1xf32, #tpu.memory_space<vmem>>) attributes {dimension_semantics = [#tpu.dimension_semantics<parallel>, #tpu.dimension_semantics<arbitrary>], iteration_bounds = array<i64: 1, 1>, scalar_prefetch = 0 : i64, scratch_operands = 1 : i64, tpu.core_type = #tpu.core_type<tc>, window_params = [{transform_indices = @transform_0, window_bounds = array<i64: 1, 128>}, {transform_indices = @transform_1, window_bounds = array<i64: 1, 128>}, {transform_indices = @transform_2, window_bounds = array<i64: 1, 1>}]} {
    %c0_i32 = arith.constant 0 : i32
    %0 = arith.cmpi eq, %arg1, %c0_i32 : i32
    %1 = arith.extui %0 : i1 to i32
    %c0_i32_0 = arith.constant 0 : i32
    %2 = arith.cmpi ne, %1, %c0_i32_0 : i32
    scf.if %2 {
      %cst_76 = arith.constant 0.000000e+00 : f32
      %256 = vector.broadcast %cst_76 : f32 to vector<1x1xf32>
      %c0_77 = arith.constant 0 : index
      %c0_78 = arith.constant 0 : index
      %257 = vector.load %arg5[%c0_77, %c0_78] : memref<1x1xf32, #tpu.memory_space<vmem>>, vector<1x1xf32>
      tpu.vector_store %arg5[%c0_77, %c0_78], %256 {strides = array<i32>} : memref<1x1xf32, #tpu.memory_space<vmem>>, vector<1x1xf32>,
    } else {
    }
    %c0 = arith.constant 0 : index
    %c0_1 = arith.constant 0 : index
    %3 = vector.load %arg2[%c0, %c0_1] : memref<1x128xf32, #tpu.memory_space<vmem>>, vector<1x128xf32>
    %c0_2 = arith.constant 0 : index
    %c0_3 = arith.constant 0 : index
    %4 = vector.load %arg3[%c0_2, %c0_3] : memref<1x128xf32, #tpu.memory_space<vmem>>, vector<1x128xf32>
    %cst = arith.constant 0.000000e+00 : f32
    %5 = vector.broadcast %cst : f32 to vector<1x1xf32>
    %6 = vector.extract_strided_slice %3 {offsets = [0, 0], sizes = [1, 16], strides = [1, 1]} : vector<1x128xf32> to vector<1x16xf32>
    %7 = vector.extract_strided_slice %4 {offsets = [0, 0], sizes = [1, 16], strides = [1, 1]} : vector<1x128xf32> to vector<1x16xf32>
    %cst_4 = arith.constant dense<0.000000e+00> : vector<1xf32>
    %8 = vector.multi_reduction <add>, %6, %cst_4 [1] : vector<1x16xf32> to vector<1xf32>
    %9 = vector.shape_cast %8 : vector<1xf32> to vector<1x1xf32>
    %cst_5 = arith.constant 1.600000e+01 : f32
    %10 = vector.broadcast %cst_5 : f32 to vector<1x1xf32>
    %11 = arith.divf %9, %10 : vector<1x1xf32>
    %12 = vector.broadcast %11 : vector<1x1xf32> to vector<1x16xf32>
    %13 = arith.subf %6, %12 : vector<1x16xf32>
    %cst_6 = arith.constant dense<0.000000e+00> : vector<1xf32>
    %14 = vector.multi_reduction <add>, %7, %cst_6 [1] : vector<1x16xf32> to vector<1xf32>
    %15 = vector.shape_cast %14 : vector<1xf32> to vector<1x1xf32>
    %cst_7 = arith.constant 1.600000e+01 : f32
    %16 = vector.broadcast %cst_7 : f32 to vector<1x1xf32>
    %17 = arith.divf %15, %16 : vector<1x1xf32>
    %18 = vector.broadcast %17 : vector<1x1xf32> to vector<1x16xf32>
    %19 = arith.subf %7, %18 : vector<1x16xf32>
    %20 = arith.mulf %13, %19 : vector<1x16xf32>
    %cst_8 = arith.constant dense<0.000000e+00> : vector<1xf32>
    %21 = vector.multi_reduction <add>, %20, %cst_8 [1] : vector<1x16xf32> to vector<1xf32>
    %22 = vector.shape_cast %21 : vector<1xf32> to vector<1x1xf32>
    %23 = arith.mulf %13, %13 : vector<1x16xf32>
    %cst_9 = arith.constant dense<0.000000e+00> : vector<1xf32>
    %24 = vector.multi_reduction <add>, %23, %cst_9 [1] : vector<1x16xf32> to vector<1xf32>
    %25 = vector.shape_cast %24 : vector<1xf32> to vector<1x1xf32>
    %26 = math.sqrt %25 : vector<1x1xf32>
    %27 = arith.mulf %19, %19 : vector<1x16xf32>
    %cst_10 = arith.constant dense<0.000000e+00> : vector<1xf32>
    %28 = vector.multi_reduction <add>, %27, %cst_10 [1] : vector<1x16xf32> to vector<1xf32>
    %29 = vector.shape_cast %28 : vector<1xf32> to vector<1x1xf32>
    %30 = math.sqrt %29 : vector<1x1xf32>
    %31 = arith.mulf %26, %30 : vector<1x1xf32>
    %cst_11 = arith.constant 9.99999997E-7 : f32
    %32 = vector.broadcast %cst_11 : f32 to vector<1x1xf32>
    %33 = arith.addf %31, %32 : vector<1x1xf32>
    %34 = arith.divf %22, %33 : vector<1x1xf32>
    %35 = arith.addf %5, %34 : vector<1x1xf32>
    %36 = vector.extract_strided_slice %3 {offsets = [0, 16], sizes = [1, 16], strides = [1, 1]} : vector<1x128xf32> to vector<1x16xf32>
    %37 = vector.extract_strided_slice %4 {offsets = [0, 16], sizes = [1, 16], strides = [1, 1]} : vector<1x128xf32> to vector<1x16xf32>
    %cst_12 = arith.constant dense<0.000000e+00> : vector<1xf32>
    %38 = vector.multi_reduction <add>, %36, %cst_12 [1] : vector<1x16xf32> to vector<1xf32>
    %39 = vector.shape_cast %38 : vector<1xf32> to vector<1x1xf32>
    %cst_13 = arith.constant 1.600000e+01 : f32
    %40 = vector.broadcast %cst_13 : f32 to vector<1x1xf32>
    %41 = arith.divf %39, %40 : vector<1x1xf32>
    %42 = vector.broadcast %41 : vector<1x1xf32> to vector<1x16xf32>
    %43 = arith.subf %36, %42 : vector<1x16xf32>
    %cst_14 = arith.constant dense<0.000000e+00> : vector<1xf32>
    %44 = vector.multi_reduction <add>, %37, %cst_14 [1] : vector<1x16xf32> to vector<1xf32>
    %45 = vector.shape_cast %44 : vector<1xf32> to vector<1x1xf32>
    %cst_15 = arith.constant 1.600000e+01 : f32
    %46 = vector.broadcast %cst_15 : f32 to vector<1x1xf32>
    %47 = arith.divf %45, %46 : vector<1x1xf32>
    %48 = vector.broadcast %47 : vector<1x1xf32> to vector<1x16xf32>
    %49 = arith.subf %37, %48 : vector<1x16xf32>
    %50 = arith.mulf %43, %49 : vector<1x16xf32>
    %cst_16 = arith.constant dense<0.000000e+00> : vector<1xf32>
    %51 = vector.multi_reduction <add>, %50, %cst_16 [1] : vector<1x16xf32> to vector<1xf32>
    %52 = vector.shape_cast %51 : vector<1xf32> to vector<1x1xf32>
    %53 = arith.mulf %43, %43 : vector<1x16xf32>
    %cst_17 = arith.constant dense<0.000000e+00> : vector<1xf32>
    %54 = vector.multi_reduction <add>, %53, %cst_17 [1] : vector<1x16xf32> to vector<1xf32>
    %55 = vector.shape_cast %54 : vector<1xf32> to vector<1x1xf32>
    %56 = math.sqrt %55 : vector<1x1xf32>
    %57 = arith.mulf %49, %49 : vector<1x16xf32>
    %cst_18 = arith.constant dense<0.000000e+00> : vector<1xf32>
    %58 = vector.multi_reduction <add>, %57, %cst_18 [1] : vector<1x16xf32> to vector<1xf32>
    %59 = vector.shape_cast %58 : vector<1xf32> to vector<1x1xf32>
    %60 = math.sqrt %59 : vector<1x1xf32>
    %61 = arith.mulf %56, %60 : vector<1x1xf32>
    %cst_19 = arith.constant 9.99999997E-7 : f32
    %62 = vector.broadcast %cst_19 : f32 to vector<1x1xf32>
    %63 = arith.addf %61, %62 : vector<1x1xf32>
    %64 = arith.divf %52, %63 : vector<1x1xf32>
    %65 = arith.addf %35, %64 : vector<1x1xf32>
    %66 = vector.extract_strided_slice %3 {offsets = [0, 32], sizes = [1, 16], strides = [1, 1]} : vector<1x128xf32> to vector<1x16xf32>
    %67 = vector.extract_strided_slice %4 {offsets = [0, 32], sizes = [1, 16], strides = [1, 1]} : vector<1x128xf32> to vector<1x16xf32>
    %cst_20 = arith.constant dense<0.000000e+00> : vector<1xf32>
    %68 = vector.multi_reduction <add>, %66, %cst_20 [1] : vector<1x16xf32> to vector<1xf32>
    %69 = vector.shape_cast %68 : vector<1xf32> to vector<1x1xf32>
    %cst_21 = arith.constant 1.600000e+01 : f32
    %70 = vector.broadcast %cst_21 : f32 to vector<1x1xf32>
    %71 = arith.divf %69, %70 : vector<1x1xf32>
    %72 = vector.broadcast %71 : vector<1x1xf32> to vector<1x16xf32>
    %73 = arith.subf %66, %72 : vector<1x16xf32>
    %cst_22 = arith.constant dense<0.000000e+00> : vector<1xf32>
    %74 = vector.multi_reduction <add>, %67, %cst_22 [1] : vector<1x16xf32> to vector<1xf32>
    %75 = vector.shape_cast %74 : vector<1xf32> to vector<1x1xf32>
    %cst_23 = arith.constant 1.600000e+01 : f32
    %76 = vector.broadcast %cst_23 : f32 to vector<1x1xf32>
    %77 = arith.divf %75, %76 : vector<1x1xf32>
    %78 = vector.broadcast %77 : vector<1x1xf32> to vector<1x16xf32>
    %79 = arith.subf %67, %78 : vector<1x16xf32>
    %80 = arith.mulf %73, %79 : vector<1x16xf32>
    %cst_24 = arith.constant dense<0.000000e+00> : vector<1xf32>
    %81 = vector.multi_reduction <add>, %80, %cst_24 [1] : vector<1x16xf32> to vector<1xf32>
    %82 = vector.shape_cast %81 : vector<1xf32> to vector<1x1xf32>
    %83 = arith.mulf %73, %73 : vector<1x16xf32>
    %cst_25 = arith.constant dense<0.000000e+00> : vector<1xf32>
    %84 = vector.multi_reduction <add>, %83, %cst_25 [1] : vector<1x16xf32> to vector<1xf32>
    %85 = vector.shape_cast %84 : vector<1xf32> to vector<1x1xf32>
    %86 = math.sqrt %85 : vector<1x1xf32>
    %87 = arith.mulf %79, %79 : vector<1x16xf32>
    %cst_26 = arith.constant dense<0.000000e+00> : vector<1xf32>
    %88 = vector.multi_reduction <add>, %87, %cst_26 [1] : vector<1x16xf32> to vector<1xf32>
    %89 = vector.shape_cast %88 : vector<1xf32> to vector<1x1xf32>
    %90 = math.sqrt %89 : vector<1x1xf32>
    %91 = arith.mulf %86, %90 : vector<1x1xf32>
    %cst_27 = arith.constant 9.99999997E-7 : f32
    %92 = vector.broadcast %cst_27 : f32 to vector<1x1xf32>
    %93 = arith.addf %91, %92 : vector<1x1xf32>
    %94 = arith.divf %82, %93 : vector<1x1xf32>
    %95 = arith.addf %65, %94 : vector<1x1xf32>
    %96 = vector.extract_strided_slice %3 {offsets = [0, 48], sizes = [1, 16], strides = [1, 1]} : vector<1x128xf32> to vector<1x16xf32>
    %97 = vector.extract_strided_slice %4 {offsets = [0, 48], sizes = [1, 16], strides = [1, 1]} : vector<1x128xf32> to vector<1x16xf32>
    %cst_28 = arith.constant dense<0.000000e+00> : vector<1xf32>
    %98 = vector.multi_reduction <add>, %96, %cst_28 [1] : vector<1x16xf32> to vector<1xf32>
    %99 = vector.shape_cast %98 : vector<1xf32> to vector<1x1xf32>
    %cst_29 = arith.constant 1.600000e+01 : f32
    %100 = vector.broadcast %cst_29 : f32 to vector<1x1xf32>
    %101 = arith.divf %99, %100 : vector<1x1xf32>
    %102 = vector.broadcast %101 : vector<1x1xf32> to vector<1x16xf32>
    %103 = arith.subf %96, %102 : vector<1x16xf32>
    %cst_30 = arith.constant dense<0.000000e+00> : vector<1xf32>
    %104 = vector.multi_reduction <add>, %97, %cst_30 [1] : vector<1x16xf32> to vector<1xf32>
    %105 = vector.shape_cast %104 : vector<1xf32> to vector<1x1xf32>
    %cst_31 = arith.constant 1.600000e+01 : f32
    %106 = vector.broadcast %cst_31 : f32 to vector<1x1xf32>
    %107 = arith.divf %105, %106 : vector<1x1xf32>
    %108 = vector.broadcast %107 : vector<1x1xf32> to vector<1x16xf32>
    %109 = arith.subf %97, %108 : vector<1x16xf32>
    %110 = arith.mulf %103, %109 : vector<1x16xf32>
    %cst_32 = arith.constant dense<0.000000e+00> : vector<1xf32>
    %111 = vector.multi_reduction <add>, %110, %cst_32 [1] : vector<1x16xf32> to vector<1xf32>
    %112 = vector.shape_cast %111 : vector<1xf32> to vector<1x1xf32>
    %113 = arith.mulf %103, %103 : vector<1x16xf32>
    %cst_33 = arith.constant dense<0.000000e+00> : vector<1xf32>
    %114 = vector.multi_reduction <add>, %113, %cst_33 [1] : vector<1x16xf32> to vector<1xf32>
    %115 = vector.shape_cast %114 : vector<1xf32> to vector<1x1xf32>
    %116 = math.sqrt %115 : vector<1x1xf32>
    %117 = arith.mulf %109, %109 : vector<1x16xf32>
    %cst_34 = arith.constant dense<0.000000e+00> : vector<1xf32>
    %118 = vector.multi_reduction <add>, %117, %cst_34 [1] : vector<1x16xf32> to vector<1xf32>
    %119 = vector.shape_cast %118 : vector<1xf32> to vector<1x1xf32>
    %120 = math.sqrt %119 : vector<1x1xf32>
    %121 = arith.mulf %116, %120 : vector<1x1xf32>
    %cst_35 = arith.constant 9.99999997E-7 : f32
    %122 = vector.broadcast %cst_35 : f32 to vector<1x1xf32>
    %123 = arith.addf %121, %122 : vector<1x1xf32>
    %124 = arith.divf %112, %123 : vector<1x1xf32>
    %125 = arith.addf %95, %124 : vector<1x1xf32>
    %126 = vector.extract_strided_slice %3 {offsets = [0, 64], sizes = [1, 16], strides = [1, 1]} : vector<1x128xf32> to vector<1x16xf32>
    %127 = vector.extract_strided_slice %4 {offsets = [0, 64], sizes = [1, 16], strides = [1, 1]} : vector<1x128xf32> to vector<1x16xf32>
    %cst_36 = arith.constant dense<0.000000e+00> : vector<1xf32>
    %128 = vector.multi_reduction <add>, %126, %cst_36 [1] : vector<1x16xf32> to vector<1xf32>
    %129 = vector.shape_cast %128 : vector<1xf32> to vector<1x1xf32>
    %cst_37 = arith.constant 1.600000e+01 : f32
    %130 = vector.broadcast %cst_37 : f32 to vector<1x1xf32>
    %131 = arith.divf %129, %130 : vector<1x1xf32>
    %132 = vector.broadcast %131 : vector<1x1xf32> to vector<1x16xf32>
    %133 = arith.subf %126, %132 : vector<1x16xf32>
    %cst_38 = arith.constant dense<0.000000e+00> : vector<1xf32>
    %134 = vector.multi_reduction <add>, %127, %cst_38 [1] : vector<1x16xf32> to vector<1xf32>
    %135 = vector.shape_cast %134 : vector<1xf32> to vector<1x1xf32>
    %cst_39 = arith.constant 1.600000e+01 : f32
    %136 = vector.broadcast %cst_39 : f32 to vector<1x1xf32>
    %137 = arith.divf %135, %136 : vector<1x1xf32>
    %138 = vector.broadcast %137 : vector<1x1xf32> to vector<1x16xf32>
    %139 = arith.subf %127, %138 : vector<1x16xf32>
    %140 = arith.mulf %133, %139 : vector<1x16xf32>
    %cst_40 = arith.constant dense<0.000000e+00> : vector<1xf32>
    %141 = vector.multi_reduction <add>, %140, %cst_40 [1] : vector<1x16xf32> to vector<1xf32>
    %142 = vector.shape_cast %141 : vector<1xf32> to vector<1x1xf32>
    %143 = arith.mulf %133, %133 : vector<1x16xf32>
    %cst_41 = arith.constant dense<0.000000e+00> : vector<1xf32>
    %144 = vector.multi_reduction <add>, %143, %cst_41 [1] : vector<1x16xf32> to vector<1xf32>
    %145 = vector.shape_cast %144 : vector<1xf32> to vector<1x1xf32>
    %146 = math.sqrt %145 : vector<1x1xf32>
    %147 = arith.mulf %139, %139 : vector<1x16xf32>
    %cst_42 = arith.constant dense<0.000000e+00> : vector<1xf32>
    %148 = vector.multi_reduction <add>, %147, %cst_42 [1] : vector<1x16xf32> to vector<1xf32>
    %149 = vector.shape_cast %148 : vector<1xf32> to vector<1x1xf32>
    %150 = math.sqrt %149 : vector<1x1xf32>
    %151 = arith.mulf %146, %150 : vector<1x1xf32>
    %cst_43 = arith.constant 9.99999997E-7 : f32
    %152 = vector.broadcast %cst_43 : f32 to vector<1x1xf32>
    %153 = arith.addf %151, %152 : vector<1x1xf32>
    %154 = arith.divf %142, %153 : vector<1x1xf32>
    %155 = arith.addf %125, %154 : vector<1x1xf32>
    %156 = vector.extract_strided_slice %3 {offsets = [0, 80], sizes = [1, 16], strides = [1, 1]} : vector<1x128xf32> to vector<1x16xf32>
    %157 = vector.extract_strided_slice %4 {offsets = [0, 80], sizes = [1, 16], strides = [1, 1]} : vector<1x128xf32> to vector<1x16xf32>
    %cst_44 = arith.constant dense<0.000000e+00> : vector<1xf32>
    %158 = vector.multi_reduction <add>, %156, %cst_44 [1] : vector<1x16xf32> to vector<1xf32>
    %159 = vector.shape_cast %158 : vector<1xf32> to vector<1x1xf32>
    %cst_45 = arith.constant 1.600000e+01 : f32
    %160 = vector.broadcast %cst_45 : f32 to vector<1x1xf32>
    %161 = arith.divf %159, %160 : vector<1x1xf32>
    %162 = vector.broadcast %161 : vector<1x1xf32> to vector<1x16xf32>
    %163 = arith.subf %156, %162 : vector<1x16xf32>
    %cst_46 = arith.constant dense<0.000000e+00> : vector<1xf32>
    %164 = vector.multi_reduction <add>, %157, %cst_46 [1] : vector<1x16xf32> to vector<1xf32>
    %165 = vector.shape_cast %164 : vector<1xf32> to vector<1x1xf32>
    %cst_47 = arith.constant 1.600000e+01 : f32
    %166 = vector.broadcast %cst_47 : f32 to vector<1x1xf32>
    %167 = arith.divf %165, %166 : vector<1x1xf32>
    %168 = vector.broadcast %167 : vector<1x1xf32> to vector<1x16xf32>
    %169 = arith.subf %157, %168 : vector<1x16xf32>
    %170 = arith.mulf %163, %169 : vector<1x16xf32>
    %cst_48 = arith.constant dense<0.000000e+00> : vector<1xf32>
    %171 = vector.multi_reduction <add>, %170, %cst_48 [1] : vector<1x16xf32> to vector<1xf32>
    %172 = vector.shape_cast %171 : vector<1xf32> to vector<1x1xf32>
    %173 = arith.mulf %163, %163 : vector<1x16xf32>
    %cst_49 = arith.constant dense<0.000000e+00> : vector<1xf32>
    %174 = vector.multi_reduction <add>, %173, %cst_49 [1] : vector<1x16xf32> to vector<1xf32>
    %175 = vector.shape_cast %174 : vector<1xf32> to vector<1x1xf32>
    %176 = math.sqrt %175 : vector<1x1xf32>
    %177 = arith.mulf %169, %169 : vector<1x16xf32>
    %cst_50 = arith.constant dense<0.000000e+00> : vector<1xf32>
    %178 = vector.multi_reduction <add>, %177, %cst_50 [1] : vector<1x16xf32> to vector<1xf32>
    %179 = vector.shape_cast %178 : vector<1xf32> to vector<1x1xf32>
    %180 = math.sqrt %179 : vector<1x1xf32>
    %181 = arith.mulf %176, %180 : vector<1x1xf32>
    %cst_51 = arith.constant 9.99999997E-7 : f32
    %182 = vector.broadcast %cst_51 : f32 to vector<1x1xf32>
    %183 = arith.addf %181, %182 : vector<1x1xf32>
    %184 = arith.divf %172, %183 : vector<1x1xf32>
    %185 = arith.addf %155, %184 : vector<1x1xf32>
    %186 = vector.extract_strided_slice %3 {offsets = [0, 96], sizes = [1, 16], strides = [1, 1]} : vector<1x128xf32> to vector<1x16xf32>
    %187 = vector.extract_strided_slice %4 {offsets = [0, 96], sizes = [1, 16], strides = [1, 1]} : vector<1x128xf32> to vector<1x16xf32>
    %cst_52 = arith.constant dense<0.000000e+00> : vector<1xf32>
    %188 = vector.multi_reduction <add>, %186, %cst_52 [1] : vector<1x16xf32> to vector<1xf32>
    %189 = vector.shape_cast %188 : vector<1xf32> to vector<1x1xf32>
    %cst_53 = arith.constant 1.600000e+01 : f32
    %190 = vector.broadcast %cst_53 : f32 to vector<1x1xf32>
    %191 = arith.divf %189, %190 : vector<1x1xf32>
    %192 = vector.broadcast %191 : vector<1x1xf32> to vector<1x16xf32>
    %193 = arith.subf %186, %192 : vector<1x16xf32>
    %cst_54 = arith.constant dense<0.000000e+00> : vector<1xf32>
    %194 = vector.multi_reduction <add>, %187, %cst_54 [1] : vector<1x16xf32> to vector<1xf32>
    %195 = vector.shape_cast %194 : vector<1xf32> to vector<1x1xf32>
    %cst_55 = arith.constant 1.600000e+01 : f32
    %196 = vector.broadcast %cst_55 : f32 to vector<1x1xf32>
    %197 = arith.divf %195, %196 : vector<1x1xf32>
    %198 = vector.broadcast %197 : vector<1x1xf32> to vector<1x16xf32>
    %199 = arith.subf %187, %198 : vector<1x16xf32>
    %200 = arith.mulf %193, %199 : vector<1x16xf32>
    %cst_56 = arith.constant dense<0.000000e+00> : vector<1xf32>
    %201 = vector.multi_reduction <add>, %200, %cst_56 [1] : vector<1x16xf32> to vector<1xf32>
    %202 = vector.shape_cast %201 : vector<1xf32> to vector<1x1xf32>
    %203 = arith.mulf %193, %193 : vector<1x16xf32>
    %cst_57 = arith.constant dense<0.000000e+00> : vector<1xf32>
    %204 = vector.multi_reduction <add>, %203, %cst_57 [1] : vector<1x16xf32> to vector<1xf32>
    %205 = vector.shape_cast %204 : vector<1xf32> to vector<1x1xf32>
    %206 = math.sqrt %205 : vector<1x1xf32>
    %207 = arith.mulf %199, %199 : vector<1x16xf32>
    %cst_58 = arith.constant dense<0.000000e+00> : vector<1xf32>
    %208 = vector.multi_reduction <add>, %207, %cst_58 [1] : vector<1x16xf32> to vector<1xf32>
    %209 = vector.shape_cast %208 : vector<1xf32> to vector<1x1xf32>
    %210 = math.sqrt %209 : vector<1x1xf32>
    %211 = arith.mulf %206, %210 : vector<1x1xf32>
    %cst_59 = arith.constant 9.99999997E-7 : f32
    %212 = vector.broadcast %cst_59 : f32 to vector<1x1xf32>
    %213 = arith.addf %211, %212 : vector<1x1xf32>
    %214 = arith.divf %202, %213 : vector<1x1xf32>
    %215 = arith.addf %185, %214 : vector<1x1xf32>
    %216 = vector.extract_strided_slice %3 {offsets = [0, 112], sizes = [1, 16], strides = [1, 1]} : vector<1x128xf32> to vector<1x16xf32>
    %217 = vector.extract_strided_slice %4 {offsets = [0, 112], sizes = [1, 16], strides = [1, 1]} : vector<1x128xf32> to vector<1x16xf32>
    %cst_60 = arith.constant dense<0.000000e+00> : vector<1xf32>
    %218 = vector.multi_reduction <add>, %216, %cst_60 [1] : vector<1x16xf32> to vector<1xf32>
    %219 = vector.shape_cast %218 : vector<1xf32> to vector<1x1xf32>
    %cst_61 = arith.constant 1.600000e+01 : f32
    %220 = vector.broadcast %cst_61 : f32 to vector<1x1xf32>
    %221 = arith.divf %219, %220 : vector<1x1xf32>
    %222 = vector.broadcast %221 : vector<1x1xf32> to vector<1x16xf32>
    %223 = arith.subf %216, %222 : vector<1x16xf32>
    %cst_62 = arith.constant dense<0.000000e+00> : vector<1xf32>
    %224 = vector.multi_reduction <add>, %217, %cst_62 [1] : vector<1x16xf32> to vector<1xf32>
    %225 = vector.shape_cast %224 : vector<1xf32> to vector<1x1xf32>
    %cst_63 = arith.constant 1.600000e+01 : f32
    %226 = vector.broadcast %cst_63 : f32 to vector<1x1xf32>
    %227 = arith.divf %225, %226 : vector<1x1xf32>
    %228 = vector.broadcast %227 : vector<1x1xf32> to vector<1x16xf32>
    %229 = arith.subf %217, %228 : vector<1x16xf32>
    %230 = arith.mulf %223, %229 : vector<1x16xf32>
    %cst_64 = arith.constant dense<0.000000e+00> : vector<1xf32>
    %231 = vector.multi_reduction <add>, %230, %cst_64 [1] : vector<1x16xf32> to vector<1xf32>
    %232 = vector.shape_cast %231 : vector<1xf32> to vector<1x1xf32>
    %233 = arith.mulf %223, %223 : vector<1x16xf32>
    %cst_65 = arith.constant dense<0.000000e+00> : vector<1xf32>
    %234 = vector.multi_reduction <add>, %233, %cst_65 [1] : vector<1x16xf32> to vector<1xf32>
    %235 = vector.shape_cast %234 : vector<1xf32> to vector<1x1xf32>
    %236 = math.sqrt %235 : vector<1x1xf32>
    %237 = arith.mulf %229, %229 : vector<1x16xf32>
    %cst_66 = arith.constant dense<0.000000e+00> : vector<1xf32>
    %238 = vector.multi_reduction <add>, %237, %cst_66 [1] : vector<1x16xf32> to vector<1xf32>
    %239 = vector.shape_cast %238 : vector<1xf32> to vector<1x1xf32>
    %240 = math.sqrt %239 : vector<1x1xf32>
    %241 = arith.mulf %236, %240 : vector<1x1xf32>
    %cst_67 = arith.constant 9.99999997E-7 : f32
    %242 = vector.broadcast %cst_67 : f32 to vector<1x1xf32>
    %243 = arith.addf %241, %242 : vector<1x1xf32>
    %244 = arith.divf %232, %243 : vector<1x1xf32>
    %245 = arith.addf %215, %244 : vector<1x1xf32>
    %c0_68 = arith.constant 0 : index
    %c0_69 = arith.constant 0 : index
    %246 = vector.load %arg5[%c0_68, %c0_69] : memref<1x1xf32, #tpu.memory_space<vmem>>, vector<1x1xf32>
    %cst_70 = arith.constant dense<0.000000e+00> : vector<1xf32>
    %247 = vector.multi_reduction <add>, %245, %cst_70 [1] : vector<1x1xf32> to vector<1xf32>
    %248 = vector.shape_cast %247 : vector<1xf32> to vector<1x1xf32>
    %cst_71 = arith.constant dense<0.000000e+00> : vector<1xf32>
    %249 = vector.multi_reduction <add>, %248, %cst_71 [0] : vector<1x1xf32> to vector<1xf32>
    %250 = vector.shape_cast %249 : vector<1xf32> to vector<1x1xf32>
    %251 = arith.addf %246, %250 : vector<1x1xf32>
    %c0_72 = arith.constant 0 : index
    %c0_73 = arith.constant 0 : index
    %252 = vector.load %arg5[%c0_72, %c0_73] : memref<1x1xf32, #tpu.memory_space<vmem>>, vector<1x1xf32>
    tpu.vector_store %arg5[%c0_72, %c0_73], %251 {strides = array<i32>} : memref<1x1xf32, #tpu.memory_space<vmem>>, vector<1x1xf32>,
    %c0_i32_74 = arith.constant 0 : i32
    %253 = arith.cmpi eq, %arg1, %c0_i32_74 : i32
    %254 = arith.extui %253 : i1 to i32
    %c0_i32_75 = arith.constant 0 : i32
    %255 = arith.cmpi ne, %254, %c0_i32_75 : i32
    scf.if %255 {
      %c0_76 = arith.constant 0 : index
      %c0_77 = arith.constant 0 : index
      %256 = vector.load %arg5[%c0_76, %c0_77] : memref<1x1xf32, #tpu.memory_space<vmem>>, vector<1x1xf32>
      %c0_78 = arith.constant 0 : index
      %c0_79 = arith.constant 0 : index
      %257 = vector.load %arg4[%c0_78, %c0_79] : memref<1x1xf32, #tpu.memory_space<vmem>>, vector<1x1xf32>
      tpu.vector_store %arg4[%c0_78, %c0_79], %256 {strides = array<i32>} : memref<1x1xf32, #tpu.memory_space<vmem>>, vector<1x1xf32>,
    } else {
    }
    return
  }
  func.func @transform_0(%arg0: i32, %arg1: i32) -> (i32, i32) {
    %c1_i32 = arith.constant 1 : i32
    %0 = arith.muli %arg0, %c1_i32 : i32
    %1 = arith.addi %0, %arg1 : i32
    %c0_i32 = arith.constant 0 : i32
    %2 = arith.minsi %1, %c0_i32 : i32
    %c0_i32_0 = arith.constant 0 : i32
    %c0_i32_1 = arith.constant 0 : i32
    return %2, %c0_i32_0 : i32, i32
  }
  func.func @transform_1(%arg0: i32, %arg1: i32) -> (i32, i32) {
    %c1_i32 = arith.constant 1 : i32
    %0 = arith.muli %arg0, %c1_i32 : i32
    %1 = arith.addi %0, %arg1 : i32
    %c0_i32 = arith.constant 0 : i32
    %2 = arith.minsi %1, %c0_i32 : i32
    %c0_i32_0 = arith.constant 0 : i32
    %c0_i32_1 = arith.constant 0 : i32
    return %2, %c0_i32_0 : i32, i32
  }
  func.func @transform_2(%arg0: i32, %arg1: i32) -> (i32, i32) {
    %c0_i32 = arith.constant 0 : i32
    %c0_i32_0 = arith.constant 0 : i32
    return %arg0, %c0_i32 : i32, i32
  }
}

</mosaic_0001>

<bundles_post_ra>
// kernel: tpu_custom_call.1
= control target key start
LH: loop header
LB: loop body
LE: loop exit
PB: predicated region body
PF: predicated region fallthrough
CT: control target
= control target key end

     0   :  { %7 = vsyncpa [#allocation4], 0  ;;  %s1208_s0 = inlined_call_operand.hbm [shape: f32[1,128], index: 0, kind: input, shape index: {}]   ;;  %s1209_s1 = inlined_call_operand.hbm [shape: f32[1,128], index: 1, kind: input, shape index: {}]   ;;  %s1210_s2 = inlined_call_operand.hbm [shape: f32[1,1], index: 2, kind: output, shape index: {}]  }
   0x1   :  { %8 = vsyncpa [#allocation7], 0 }
   0x2   :  { %9 = vsyncpa [#allocation5], 0  ;;  %s19_s11 = sshll.u32 %s1208_s0, 4  ;;  %s906_s12 = smov [#allocation3]   ;;  %s20_s11 = int_to_ptr.hbm [resolvable:$true] %s19_s11 }
   0x3   :  { %s21_s13 = sshll.u32 %s906_s12, 4  ;;  %s34_s16 = sshll.u32 %s1209_s1, 4  ;;  %s22_s13 = int_to_ptr.vmem [resolvable:$true] %s21_s13  ;;  %s35_s16 = int_to_ptr.hbm [resolvable:$true] %s34_s16 }
   0x4   :  { %24 = dma.hbm_to_vmem [thread:$0]  %s20_s11, 16, %s22_s13, [#allocation4]  }
   0x5   :  { %s907_s17 = smov [#allocation6]  }
   0x6   :  { %s36_s18 = sshll.u32 %s907_s17, 4  ;;  %s37_s18 = int_to_ptr.vmem [resolvable:$true] %s36_s18 }
   0x7   :  { %39 = dma.hbm_to_vmem [thread:$0]  %s35_s16, 16, %s37_s18, [#allocation7]  }
   0x8   :  { %900 = dma.done.wait [#allocation4], 16  }
   0x9   :  { %901 = vsyncadd [#allocation4], 4294967280 }
   0xa   :  { %902 = dma.done.wait [#allocation7], 16  }
   0xb   :  { %903 = vsyncadd [#allocation7], 4294967280  ;;  %vm62_vm0 = vcmask 122880   ;;  %v939_v0 = vld [vmem:[#allocation3] sm:$0x1]  ;;  %s908_s0 = smov 112  }
   0xc   :  { %v941_v1 = vld [vmem:[#allocation3] ss:$0 sm:$0xff]  ;;  %v63_v2 = vsel %vm62_vm0, %v939_v0, 0.0  ;;  %v945_v3 = vld [vmem:[#allocation6] ss:$0 sm:$0xff]  ;;  %s909_s1 = smov 96  }
   0xd   :  { %64 = vadd.xlane.f32.xlu0 %v63_v2  ;;  %136 = vrot.lane.b32.xlu2 %v941_v1, %s908_s0  ;;  %v951_v4 = vld [vmem:[#allocation6] sm:$0x1]  ;;  %s910_s19 = smov 48   ;;  %s911_s20 = smov 80   ;;  %v913_v8 = vmov 16.0  }
   0xe   :  { %146 = vrot.lane.b32.xlu1 %v945_v3, %s908_s0  ;;  %v75_v5 = vsel %vm62_vm0, %v951_v4, 0.0  ;;  %s912_s21 = smov 64   ;;  %778 = vrcp.f32 %v913_v8  ;;  %s914_s22 = smov 32  }
   0xf   :  { %s915_s23 = smov 16   ;;  %s917_s24 = smov [#allocation8]  }
  0x10   :  { %s749_s25 = sshll.u32 %s917_s24, 4  ;;  %s751_s28 = sshll.u32 %s1210_s2, 4  ;;  %s750_s25 = int_to_ptr.vmem [resolvable:$true] %s749_s25  ;;  %s752_s28 = int_to_ptr.hbm [resolvable:$true] %s751_s28 }
  0x14   :  { %v779_v11 = vpop.eup %778 }
  0x15   :  { %76 = vadd.xlane.f32.xlu0 %v75_v5  ;;  %223 = vrot.lane.b32.xlu2 %v941_v1, %s909_s1  ;;  %v67_v13 = vmul.f32 16.0, %v779_v11  ;;  %vm71_vm1 = vweird.f32 %v779_v11 }
  0x16   :  { %478 = vrot.lane.b32.xlu1 %v941_v1, %s910_s19 }
  0x17   :  { %v68_v15 = vsub.f32 1.0, %v67_v13 }
  0x19   :  { %v69_v17 = vmul.f32 %v779_v11, %v68_v15 }
  0x1b   :  { %v70_v21 = vadd.f32 %v779_v11, %v69_v17 }
  0x1d   :  { %231 = vrot.lane.b32.xlu2 %v945_v3, %s909_s1  ;;  %v973_v23 = vsel %vm71_vm1, %v779_v11, %v70_v21 }
  0x25   :  { %308 = vrot.lane.b32.xlu2 %v941_v1, %s911_s20 }
  0x29   :  { %393 = vrot.lane.b32.xlu0 %v941_v1, %s912_s21 }
  0x2d   :  { %316 = vrot.lane.b32.xlu2 %v945_v3, %s911_s20 }
  0x35   :  { %401 = vrot.lane.b32.xlu2 %v945_v3, %s912_s21 }
  0x67   :  { %v137_v6 = vpop.permute.xlu2 %136 }
  0x68   :  { %v139_v10 = vsel %vm62_vm0, %v137_v6, 0.0 }
  0x69   :  { %140 = vadd.xlane.f32.xlu0 %v139_v10 }
  0x6f   :  { %v224_v7 = vpop.permute.xlu2 %223 }
  0x70   :  { %v226_v9 = vsel %vm62_vm0, %v224_v7, 0.0 }
  0x71   :  { %227 = vadd.xlane.f32.xlu1 %v226_v9 }
  0x77   :  { %v232_v12 = vpop.permute.xlu2 %231 }
  0x78   :  { %v234_v14 = vsel %vm62_vm0, %v232_v12, 0.0 }
  0x79   :  { %235 = vadd.xlane.f32.xlu1 %v234_v14 }
  0x7f   :  { %v309_v16 = vpop.permute.xlu2 %308 }
  0x80   :  { %v65_v18 = vpop.xlane.xlu0 %64  ;;  %v147_v19 = vpop.permute.xlu1 %146  ;;  %v311_v26 = vsel %vm62_vm0, %v309_v16, 0.0 }
  0x81   :  { %v149_v20 = vsel %vm62_vm0, %v147_v19, 0.0  ;;  %v73_v34 = vmul.f32 %v973_v23, %v65_v18 }
  0x82   :  { %150 = vadd.xlane.f32.xlu0 %v149_v20 }
  0x83   :  { %v74_v36 = vsub.f32 %v939_v0, %v73_v34 }
  0x85   :  { %v84_v41 = vmul.f32 %v74_v36, %v74_v36 }
  0x87   :  { %v317_v22 = vpop.permute.xlu2 %316  ;;  %v85_v42 = vsel %vm62_vm0, %v84_v41, 0.0 }
  0x88   :  { %v77_v24 = vpop.xlane.xlu0 %76  ;;  %v319_v31 = vsel %vm62_vm0, %v317_v22, 0.0  ;;  %v479_v33 = vpop.permute.xlu1 %478 }
  0x89   :  { %v78_v25 = vmul.f32 %v77_v24, %v973_v23  ;;  %v481_v35 = vsel %vm62_vm0, %v479_v33, 0.0 }
  0x8a   :  { %312 = vadd.xlane.f32.xlu0 %v311_v26 }
  0x8b   :  { %v79_v27 = vsub.f32 %v951_v4, %v78_v25 }
  0x8d   :  { %v100_v28 = vmul.f32 %v79_v27, %v79_v27  ;;  %v80_v38 = vmul.f32 %v79_v27, %v74_v36 }
  0x8f   :  { %v402_v29 = vpop.permute.xlu2 %401  ;;  %v101_v30 = vsel %vm62_vm0, %v100_v28, 0.0  ;;  %v81_v40 = vsel %vm62_vm0, %v80_v38, 0.0 }
  0x90   :  { %102 = vadd.xlane.f32.xlu2 %v101_v30  ;;  %v404_v32 = vsel %vm62_vm0, %v402_v29, 0.0 }
  0x91   :  { %405 = vadd.xlane.f32.xlu1 %v404_v32 }
  0x92   :  { %320 = vadd.xlane.f32.xlu0 %v319_v31 }
  0x99   :  { %482 = vadd.xlane.f32.xlu1 %v481_v35 }
  0x9b   :  { %v394_v37 = vpop.permute.xlu0 %393 }
  0x9c   :  { %v396_v39 = vsel %vm62_vm0, %v394_v37, 0.0 }
  0x9d   :  { %397 = vadd.xlane.f32.xlu0 %v396_v39 }
  0xa1   :  { %82 = vadd.xlane.f32.xlu1 %v81_v40 }
  0xa8   :  { %486 = vrot.lane.b32.xlu2 %v945_v3, %s910_s19 }
  0xa9   :  { %86 = vadd.xlane.f32.xlu1 %v85_v42 }
  0xb0   :  { %563 = vrot.lane.b32.xlu2 %v941_v1, %s914_s22 }
  0xb8   :  { %648 = vrot.lane.b32.xlu2 %v941_v1, %s915_s23 }
  0xc0   :  { %656 = vrot.lane.b32.xlu2 %v945_v3, %s915_s23 }
  0xdc   :  { %v141_v43 = vpop.xlane.xlu0 %140 }
  0xdd   :  { %v142_v44 = vmul.f32 %v141_v43, %v973_v23 }
  0xdf   :  { %v143_v46 = vsub.f32 %v939_v0, %v142_v44 }
  0xe1   :  { %v163_v48 = vmul.f32 %v143_v46, %v143_v46 }
  0xe3   :  { %v165_v49 = vperm.slane %v163_v48, 0 }
  0xe4   :  { %v228_v45 = vpop.xlane.xlu1 %227 }
  0xe5   :  { %v229_v47 = vmul.f32 %v228_v45, %v973_v23  ;;  %166 = vrot.lane.b32.xlu1 %v165_v49, %s908_s0 }
  0xe7   :  { %v999_v51 = vsub.f32 %v939_v0, %v229_v47 }
  0xe9   :  { %v248_v53 = vmul.f32 %v999_v51, %v999_v51 }
  0xeb   :  { %v250_v55 = vperm.slane %v248_v53, 0 }
  0xec   :  { %v236_v52 = vpop.xlane.xlu1 %235 }
  0xed   :  { %v237_v54 = vmul.f32 %v236_v52, %v973_v23  ;;  %251 = vrot.lane.b32.xlu1 %v250_v55, %s909_s1 }
  0xef   :  { %v1007_v57 = vsub.f32 %v951_v4, %v237_v54 }
  0xf1   :  { %v269_v59 = vmul.f32 %v1007_v57, %v1007_v57  ;;  %v239_v52 = vmul.f32 %v1007_v57, %v999_v51 }
  0xf3   :  { %v271_v61 = vperm.slane %v269_v59, 0  ;;  %v241_v54 = vperm.slane %v239_v52, 0 }
  0xf5   :  { %v151_v50 = vpop.xlane.xlu0 %150  ;;  %272 = vrot.lane.b32.xlu1 %v271_v61, %s909_s1 }
  0xf6   :  { %v152_v24 = vmul.f32 %v151_v50, %v973_v23 }
  0xf8   :  { %v153_v30 = vsub.f32 %v951_v4, %v152_v24 }
  0xfa   :  { %v154_v33 = vmul.f32 %v153_v30, %v143_v46  ;;  %v184_v39 = vmul.f32 %v153_v30, %v153_v30 }
  0xfc   :  { %v156_v37 = vperm.slane %v154_v33, 0  ;;  %v186_v43 = vperm.slane %v184_v39, 0 }
  0xfd   :  { %v313_v56 = vpop.xlane.xlu0 %312 }
  0xfe   :  { %v314_v63 = vmul.f32 %v313_v56, %v973_v23 }
 0x100   :  { %v315_v2 = vsub.f32 %v939_v0, %v314_v63 }
 0x102   :  { %v333_v7 = vmul.f32 %v315_v2, %v315_v2 }
 0x103   :  { %v1009_v58 = vpop.xlane.xlu2 %102 }
 0x104   :  { %v406_v60 = vpop.xlane.xlu1 %405  ;;  %780 = vrsqrt.f32 %v1009_v58  ;;  %v335_v11 = vperm.slane %v333_v7, 0  ;;  %vm111_vm2 = vcmp.eq.f32.partialorder %v1009_v58, inf  ;;  %v114_v45 = vand.u32 2147483648, %v1009_v58 }
 0x105   :  { %v321_v62 = vpop.xlane.xlu0 %320  ;;  %v407_v13 = vmul.f32 %v406_v60, %v973_v23  ;;  %vm113_vm4 = vcmp.eq.f32.partialorder %v1009_v58, 0.0 }
 0x106   :  { %v322_v1 = vmul.f32 %v321_v62, %v973_v23  ;;  %336 = vrot.lane.b32.xlu1 %v335_v11, %s911_s20 }
 0x107   :  { %v408_v16 = vsub.f32 %v951_v4, %v407_v13 }
 0x108   :  { %v1018_v5 = vsub.f32 %v951_v4, %v322_v1 }
 0x109   :  { %v439_v21 = vmul.f32 %v408_v16, %v408_v16 }
 0x10a   :  { %v324_v8 = vmul.f32 %v1018_v5, %v315_v2  ;;  %v781_v14 = vpop.eup %780  ;;  %v354_v55 = vmul.f32 %v1018_v5, %v1018_v5 }
 0x10b   :  { %v487_v6 = vpop.permute.xlu2 %486  ;;  %v105_v17 = vmul.f32 %v781_v14, %v1009_v58  ;;  %v441_v25 = vperm.slane %v439_v21, 0 }
 0x10c   :  { %v1021_v9 = vpop.xlane.xlu1 %482  ;;  %v489_v10 = vsel %vm62_vm0, %v487_v6, 0.0  ;;  %v326_v12 = vperm.slane %v324_v8, 0  ;;  %v356_v59 = vperm.slane %v354_v55, 0 }
 0x10d   :  { %490 = vadd.xlane.f32.xlu0 %v489_v10  ;;  %v106_v22 = vmul.f32 %v781_v14, %v105_v17  ;;  %v484_v8 = vmul.f32 %v1021_v9, %v973_v23 }
 0x10e   :  { %327 = vrot.lane.b32.xlu2 %v326_v12, %s911_s20  ;;  %442 = vrot.lane.b32.xlu1 %v441_v25, %s912_s21 }
 0x10f   :  { %v107_v28 = vmul.f32 0.5, %v106_v22  ;;  %v485_v11 = vsub.f32 %v939_v0, %v484_v8 }
 0x110   :  { %v398_v18 = vpop.xlane.xlu0 %397 }
 0x111   :  { %v399_v19 = vmul.f32 %v398_v18, %v973_v23  ;;  %v108_v31 = vsub.f32 1.5, %v107_v28 }
 0x113   :  { %v400_v20 = vsub.f32 %v939_v0, %v399_v19  ;;  %v109_v35 = vmul.f32 %v781_v14, %v108_v31  ;;  %v564_v9 = vpop.permute.xlu2 %563 }
 0x114   :  { %v1028_v15 = vpop.xlane.xlu1 %82 }
 0x115   :  { %v409_v26 = vmul.f32 %v408_v16, %v400_v20  ;;  %v110_v40 = vmul.f32 %v109_v35, %v1009_v58  ;;  %v418_v62 = vmul.f32 %v400_v20, %v400_v20 }
 0x117   :  { %v411_v29 = vperm.slane %v409_v26, 0  ;;  %v420_v2 = vperm.slane %v418_v62, 0 }
 0x119   :  { %412 = vrot.lane.b32.xlu2 %v411_v29, %s912_s21 }
 0x11b   :  { %v649_v24 = vpop.permute.xlu2 %648 }
 0x11c   :  { %v87_v27 = vpop.xlane.xlu1 %86 }
 0x11d   :  { %782 = vrsqrt.f32 %v87_v27  ;;  %vm95_vm3 = vcmp.eq.f32.partialorder %v87_v27, inf  ;;  %v98_v46 = vand.u32 2147483648, %v87_v27  ;;  %vm97_vm5 = vcmp.eq.f32.partialorder %v87_v27, 0.0 }
 0x121   :  { %571 = vrot.lane.b32.xlu0 %v945_v3, %s914_s22  ;;  %v112_v3 = vsel %vm111_vm2, %v1009_v58, %v110_v40 }
 0x122   :  { %v115_v48 = vsel %vm113_vm4, %v114_v45, %v112_v3 }
 0x123   :  { %v783_v32 = vpop.eup %782  ;;  %v657_v28 = vpop.permute.xlu2 %656 }
 0x124   :  { %v89_v34 = vmul.f32 %v783_v32, %v87_v27 }
 0x126   :  { %v90_v36 = vmul.f32 %v783_v32, %v89_v34 }
 0x128   :  { %v91_v38 = vmul.f32 0.5, %v90_v36 }
 0x129   :  { %157 = vrot.lane.b32.xlu0 %v156_v37, %s908_s0 }
 0x12a   :  { %v92_v41 = vsub.f32 1.5, %v91_v38 }
 0x12c   :  { %v93_v42 = vmul.f32 %v783_v32, %v92_v41 }
 0x12e   :  { %v94_v44 = vmul.f32 %v93_v42, %v87_v27 }
 0x130   :  { %v96_v47 = vsel %vm95_vm3, %v87_v27, %v94_v44 }
 0x131   :  { %v99_v49 = vsel %vm97_vm5, %v98_v46, %v96_v47  ;;  %187 = vrot.lane.b32.xlu0 %v186_v43, %s908_s0 }
 0x132   :  { %v116_v50 = vmul.f32 %v115_v48, %v99_v49  ;;  %v566_v48 = vsel %vm62_vm0, %v564_v9, 0.0  ;;  %v659_v49 = vsel %vm62_vm0, %v657_v28, 0.0 }
 0x134   :  { %v117_v53 = vadd.f32 1e-06, %v116_v50 }
 0x136   :  { %784 = vrcp.f32 %v117_v53  ;;  %v129_v61 = vand.u32 2147483648, %v117_v53  ;;  %v127_v1 = vand.u32 2147483647, %v117_v53  ;;  %vm123_vm7 = vweird.f32 %v117_v53 }
 0x138   :  { %v130_v57 = vor.u32 1.1754944e-38, %v129_v61  ;;  %vm128_vm9 = vcmp.eq.f32.partialorder %v127_v1, 8.507059e+37 }
 0x139   :  { %242 = vrot.lane.b32.xlu0 %v241_v54, %s909_s1 }
 0x13c   :  { %v785_v56 = vpop.eup %784 }
 0x13d   :  { %v119_v58 = vmul.f32 %v785_v56, %v117_v53  ;;  %vm124_vm6 = vweird.f32 %v785_v56 }
 0x13e   :  { %vm125_vm8 = vmor %vm123_vm7, %vm124_vm6 }
 0x13f   :  { %v120_v60 = vsub.f32 1.0, %v119_v58  ;;  %v651_v58 = vsel %vm62_vm0, %v649_v24, 0.0 }
 0x141   :  { %357 = vrot.lane.b32.xlu0 %v356_v59, %s911_s20  ;;  %v121_v63 = vmul.f32 %v785_v56, %v120_v60 }
 0x143   :  { %v122_v51 = vadd.f32 %v785_v56, %v121_v63 }
 0x145   :  { %v126_v6 = vsel %vm125_vm8, %v785_v56, %v122_v51 }
 0x146   :  { %v131_v7 = vsel %vm128_vm9, %v130_v57, %v126_v6 }
 0x147   :  { %v1054_v5 = vmul.f32 %v131_v7, %v1028_v15  ;;  %v503_v15 = vmul.f32 %v485_v11, %v485_v11 }
 0x149   :  { %421 = vrot.lane.b32.xlu0 %v420_v2, %s912_s21  ;;  %v505_v19 = vperm.slane %v503_v15, 0 }
 0x157   :  { %v167_v20 = vpop.permute.xlu1 %166 }
 0x158   :  { %v169_v33 = vsel %vm62_vm0, %v167_v20, 0.0 }
 0x15f   :  { %v252_v25 = vpop.permute.xlu1 %251 }
 0x160   :  { %v254_v30 = vsel %vm62_vm0, %v252_v25, 0.0 }
 0x167   :  { %v273_v29 = vpop.permute.xlu1 %272 }
 0x168   :  { %v328_v31 = vpop.permute.xlu2 %327  ;;  %v275_v38 = vsel %vm62_vm0, %v273_v29, 0.0 }
 0x169   :  { %v330_v34 = vsel %vm62_vm0, %v328_v31, 0.0 }
 0x173   :  { %v413_v43 = vpop.permute.xlu2 %412 }
 0x174   :  { %v415_v44 = vsel %vm62_vm0, %v413_v43, 0.0 }
 0x178   :  { %v337_v32 = vpop.permute.xlu1 %336 }
 0x179   :  { %v339_v3 = vsel %vm62_vm0, %v337_v32, 0.0 }
 0x180   :  { %v491_v10 = vpop.xlane.xlu0 %490  ;;  %v443_v36 = vpop.permute.xlu1 %442 }
 0x181   :  { %v492_v12 = vmul.f32 %v491_v10, %v973_v23  ;;  %v445_v39 = vsel %vm62_vm0, %v443_v36, 0.0 }
 0x183   :  { %v493_v13 = vsub.f32 %v951_v4, %v492_v12 }
 0x185   :  { %v524_v14 = vmul.f32 %v493_v13, %v493_v13  ;;  %v494_v16 = vmul.f32 %v493_v13, %v485_v11 }
 0x187   :  { %v526_v17 = vperm.slane %v524_v14, 0  ;;  %v496_v18 = vperm.slane %v494_v16, 0 }
 0x189   :  { %527 = vrot.lane.b32.xlu1 %v526_v17, %s910_s19  ;;  %497 = vrot.lane.b32.xlu2 %v496_v18, %s910_s19 }
 0x191   :  { %506 = vrot.lane.b32.xlu2 %v505_v19, %s910_s19 }
 0x193   :  { %v572_v21 = vpop.permute.xlu0 %571 }
 0x194   :  { %v574_v47 = vsel %vm62_vm0, %v572_v21, 0.0 }
 0x19b   :  { %v158_v22 = vpop.permute.xlu0 %157 }
 0x19c   :  { %v160_v37 = vsel %vm62_vm0, %v158_v22, 0.0 }
 0x1a3   :  { %v188_v26 = vpop.permute.xlu0 %187 }
 0x1a4   :  { %v190_v27 = vsel %vm62_vm0, %v188_v26, 0.0 }
 0x1a5   :  { %191 = vadd.xlane.f32.xlu0 %v190_v27 }
 0x1ab   :  { %v243_v35 = vpop.permute.xlu0 %242 }
 0x1ac   :  { %v245_v41 = vsel %vm62_vm0, %v243_v35, 0.0 }
 0x1ad   :  { %255 = vadd.xlane.f32.xlu0 %v254_v30 }
 0x1b3   :  { %170 = vadd.xlane.f32.xlu1 %v169_v33  ;;  %v358_v40 = vpop.permute.xlu0 %357 }
 0x1b4   :  { %v360_v42 = vsel %vm62_vm0, %v358_v40, 0.0 }
 0x1b5   :  { %331 = vadd.xlane.f32.xlu0 %v330_v34 }
 0x1ba   :  { %161 = vadd.xlane.f32.xlu2 %v160_v37 }
 0x1bb   :  { %276 = vadd.xlane.f32.xlu1 %v275_v38  ;;  %v422_v45 = vpop.permute.xlu0 %421 }
 0x1bc   :  { %v424_v46 = vsel %vm62_vm0, %v422_v45, 0.0 }
 0x1bd   :  { %446 = vadd.xlane.f32.xlu0 %v445_v39 }
 0x1c2   :  { %246 = vadd.xlane.f32.xlu2 %v245_v41 }
 0x1c3   :  { %361 = vadd.xlane.f32.xlu1 %v360_v42 }
 0x1ca   :  { %340 = vadd.xlane.f32.xlu2 %v339_v3 }
 0x1cb   :  { %416 = vadd.xlane.f32.xlu1 %v415_v44 }
 0x1d2   :  { %425 = vadd.xlane.f32.xlu2 %v424_v46 }
 0x1d3   :  { %575 = vadd.xlane.f32.xlu1 %v574_v47 }
 0x1da   :  { %567 = vadd.xlane.f32.xlu2 %v566_v48 }
 0x1db   :  { %660 = vadd.xlane.f32.xlu1 %v659_v49 }
 0x1e3   :  { %v498_v50 = vpop.permute.xlu2 %497 }
 0x1e4   :  { %v500_v52 = vsel %vm62_vm0, %v498_v50, 0.0 }
 0x1e5   :  { %501 = vadd.xlane.f32.xlu0 %v500_v52 }
 0x1eb   :  { %v507_v53 = vpop.permute.xlu2 %506 }
 0x1ec   :  { %v509_v54 = vsel %vm62_vm0, %v507_v53, 0.0 }
 0x1ed   :  { %510 = vadd.xlane.f32.xlu0 %v509_v54 }
 0x1fb   :  { %v528_v55 = vpop.permute.xlu1 %527 }
 0x1fc   :  { %v530_v56 = vsel %vm62_vm0, %v528_v55, 0.0 }
 0x1fd   :  { %531 = vadd.xlane.f32.xlu0 %v530_v56 }
 0x205   :  { %652 = vadd.xlane.f32.xlu0 %v651_v58 }
 0x218   :  { %v192_v59 = vpop.xlane.xlu0 %191 }
 0x219   :  { %786 = vrsqrt.f32 %v192_v59  ;;  %vm200_vm10 = vcmp.eq.f32.partialorder %v192_v59, inf  ;;  %v203_v31 = vand.u32 2147483648, %v192_v59  ;;  %vm202_vm12 = vcmp.eq.f32.partialorder %v192_v59, 0.0 }
 0x21f   :  { %v787_v60 = vpop.eup %786 }
 0x220   :  { %v194_v61 = vmul.f32 %v787_v60, %v192_v59  ;;  %v1084_v62 = vpop.xlane.xlu0 %255 }
 0x221   :  { %788 = vrsqrt.f32 %v1084_v62  ;;  %vm264_vm14 = vcmp.eq.f32.partialorder %v1084_v62, inf  ;;  %vm266_vm15 = vcmp.eq.f32.partialorder %v1084_v62, 0.0  ;;  %v267_v52 = vand.u32 2147483648, %v1084_v62 }
 0x222   :  { %v195_v63 = vmul.f32 %v787_v60, %v194_v61 }
 0x224   :  { %v196_v57 = vmul.f32 0.5, %v195_v63 }
 0x226   :  { %v171_v1 = vpop.xlane.xlu1 %170  ;;  %v197_v7 = vsub.f32 1.5, %v196_v57 }
 0x227   :  { %v789_v51 = vpop.eup %788  ;;  %790 = vrsqrt.f32 %v171_v1  ;;  %vm179_vm11 = vcmp.eq.f32.partialorder %v171_v1, inf  ;;  %v182_v33 = vand.u32 2147483648, %v171_v1  ;;  %vm181_vm13 = vcmp.eq.f32.partialorder %v171_v1, 0.0 }
 0x228   :  { %v1087_v2 = vpop.xlane.xlu0 %331  ;;  %v258_v6 = vmul.f32 %v789_v51, %v1084_v62  ;;  %v198_v14 = vmul.f32 %v787_v60, %v197_v7 }
 0x22a   :  { %v259_v10 = vmul.f32 %v789_v51, %v258_v6  ;;  %v199_v19 = vmul.f32 %v198_v14, %v192_v59 }
 0x22c   :  { %v260_v18 = vmul.f32 0.5, %v259_v10  ;;  %v201_v28 = vsel %vm200_vm10, %v192_v59, %v199_v19 }
 0x22d   :  { %v791_v8 = vpop.eup %790  ;;  %v1090_v11 = vpop.xlane.xlu2 %161  ;;  %v204_v36 = vsel %vm202_vm12, %v203_v31, %v201_v28 }
 0x22e   :  { %v173_v12 = vmul.f32 %v791_v8, %v171_v1  ;;  %v277_v13 = vpop.xlane.xlu1 %276  ;;  %v261_v21 = vsub.f32 1.5, %v260_v18 }
 0x22f   :  { %792 = vrsqrt.f32 %v277_v13  ;;  %vm285_vm1 = vcmp.eq.f32.partialorder %v277_v13, inf  ;;  %v288_v53 = vand.u32 2147483648, %v277_v13  ;;  %vm287_vm2 = vcmp.eq.f32.partialorder %v277_v13, 0.0 }
 0x230   :  { %v174_v16 = vmul.f32 %v791_v8, %v173_v12  ;;  %v1092_v17 = vpop.xlane.xlu0 %446  ;;  %v262_v32 = vmul.f32 %v789_v51, %v261_v21 }
 0x231   :  { %794 = vrsqrt.f32 %v1092_v17  ;;  %vm455_vm6 = vcmp.eq.f32.partialorder %v1092_v17, inf }
 0x232   :  { %v175_v15 = vmul.f32 0.5, %v174_v16  ;;  %v263_v42 = vmul.f32 %v262_v32, %v1084_v62 }
 0x234   :  { %v176_v9 = vsub.f32 1.5, %v175_v15  ;;  %v265_v47 = vsel %vm264_vm14, %v1084_v62, %v263_v42 }
 0x235   :  { %v793_v20 = vpop.eup %792  ;;  %v1095_v22 = vpop.xlane.xlu2 %246  ;;  %v268_v58 = vsel %vm266_vm15, %v267_v52, %v265_v47 }
 0x236   :  { %v177_v24 = vmul.f32 %v791_v8, %v176_v9  ;;  %v279_v25 = vmul.f32 %v793_v20, %v277_v13  ;;  %v1097_v26 = vpop.xlane.xlu1 %361 }
 0x237   :  { %796 = vrsqrt.f32 %v1097_v26  ;;  %v1100_v27 = vpop.eup %794  ;;  %vm370_vm3 = vcmp.eq.f32.partialorder %v1097_v26, inf  ;;  %vm372_vm4 = vcmp.eq.f32.partialorder %v1097_v26, 0.0  ;;  %v373_v16 = vand.u32 2147483648, %v1097_v26 }
 0x238   :  { %v178_v29 = vmul.f32 %v177_v24, %v171_v1  ;;  %v280_v30 = vmul.f32 %v793_v20, %v279_v25  ;;  %v449_v38 = vmul.f32 %v1100_v27, %v1092_v17 }
 0x23a   :  { %v180_v34 = vsel %vm179_vm11, %v171_v1, %v178_v29  ;;  %v281_v35 = vmul.f32 0.5, %v280_v30  ;;  %v450_v46 = vmul.f32 %v1100_v27, %v449_v38 }
 0x23b   :  { %v183_v37 = vsel %vm181_vm13, %v182_v33, %v180_v34  ;;  %vm457_vm13 = vcmp.eq.f32.partialorder %v1092_v17, 0.0 }
 0x23c   :  { %v205_v39 = vmul.f32 %v204_v36, %v183_v37  ;;  %v282_v40 = vsub.f32 1.5, %v281_v35  ;;  %v451_v55 = vmul.f32 0.5, %v450_v46 }
 0x23d   :  { %v797_v41 = vpop.eup %796  ;;  %v1105_v43 = vpop.xlane.xlu2 %340 }
 0x23e   :  { %v206_v3 = vadd.f32 1e-06, %v205_v39  ;;  %v283_v44 = vmul.f32 %v793_v20, %v282_v40  ;;  %v364_v45 = vmul.f32 %v797_v41, %v1097_v26  ;;  %798 = vrsqrt.f32 %v1105_v43  ;;  %v1112_v50 = vpop.xlane.xlu1 %416 }
 0x23f   :  { %v452_v62 = vsub.f32 1.5, %v451_v55  ;;  %vm349_vm7 = vcmp.eq.f32.partialorder %v1105_v43, inf  ;;  %vm351_vm8 = vcmp.eq.f32.partialorder %v1105_v43, 0.0  ;;  %v352_v25 = vand.u32 2147483648, %v1105_v43 }
 0x240   :  { %800 = vrcp.f32 %v206_v3  ;;  %v284_v48 = vmul.f32 %v283_v44, %v277_v13  ;;  %v365_v49 = vmul.f32 %v797_v41, %v364_v45  ;;  %v218_v14 = vand.u32 2147483648, %v206_v3 }
 0x241   :  { %v453_v19 = vmul.f32 %v1100_v27, %v452_v62  ;;  %vm212_vm9 = vweird.f32 %v206_v3 }
 0x242   :  { %v286_v54 = vsel %vm285_vm1, %v277_v13, %v284_v48  ;;  %v366_v56 = vmul.f32 0.5, %v365_v49  ;;  %v216_v13 = vand.u32 2147483647, %v206_v3  ;;  %v219_v27 = vor.u32 1.1754944e-38, %v218_v14 }
 0x243   :  { %v289_v59 = vsel %vm287_vm2, %v288_v53, %v286_v54  ;;  %v454_v36 = vmul.f32 %v453_v19, %v1092_v17 }
 0x244   :  { %v799_v60 = vpop.eup %798  ;;  %v290_v61 = vmul.f32 %v289_v59, %v268_v58  ;;  %v367_v63 = vsub.f32 1.5, %v366_v56  ;;  %vm217_vm10 = vcmp.eq.f32.partialorder %v216_v13, 8.507059e+37 }
 0x245   :  { %v1116_v1 = vpop.xlane.xlu2 %425  ;;  %v343_v57 = vmul.f32 %v799_v60, %v1105_v43 }
 0x246   :  { %v801_v51 = vpop.eup %800  ;;  %802 = vrsqrt.f32 %v1116_v1  ;;  %v1120_v7 = vadd.f32 1e-06, %v290_v61  ;;  %v368_v8 = vmul.f32 %v797_v41, %v367_v63  ;;  %v576_v20 = vpop.xlane.xlu1 %575  ;;  %vm434_vm1 = vcmp.eq.f32.partialorder %v1116_v1, inf }
 0x247   :  { %v208_v6 = vmul.f32 %v801_v51, %v206_v3  ;;  %v344_v10 = vmul.f32 %v799_v60, %v343_v57  ;;  %vm213_vm5 = vweird.f32 %v801_v51  ;;  %v577_v32 = vmul.f32 %v576_v20, %v973_v23 }
 0x248   :  { %804 = vrcp.f32 %v1120_v7  ;;  %v369_v9 = vmul.f32 %v368_v8, %v1097_v26  ;;  %vm214_vm11 = vmor %vm212_vm9, %vm213_vm5  ;;  %v301_v41 = vand.u32 2147483647, %v1120_v7  ;;  %v303_v44 = vand.u32 2147483648, %v1120_v7 }
 0x249   :  { %v209_v12 = vsub.f32 1.0, %v208_v6  ;;  %v345_v18 = vmul.f32 0.5, %v344_v10  ;;  %v578_v52 = vsub.f32 %v951_v4, %v577_v32  ;;  %vm297_vm14 = vweird.f32 %v1120_v7 }
 0x24a   :  { %v371_v37 = vsel %vm370_vm3, %v1097_v26, %v369_v9  ;;  %v456_v26 = vsel %vm455_vm6, %v1092_v17, %v454_v36  ;;  %v304_v57 = vor.u32 1.1754944e-38, %v303_v44  ;;  %vm302_vm2 = vcmp.eq.f32.partialorder %v301_v41, 8.507059e+37 }
 0x24b   :  { %v210_v15 = vmul.f32 %v801_v51, %v209_v12  ;;  %v346_v24 = vsub.f32 1.5, %v345_v18  ;;  %v374_v48 = vsel %vm372_vm4, %v373_v16, %v371_v37  ;;  %v437_v10 = vand.u32 2147483648, %v1116_v1 }
 0x24c   :  { %v803_v21 = vpop.eup %802  ;;  %vm436_vm3 = vcmp.eq.f32.partialorder %v1116_v1, 0.0  ;;  %v609_v19 = vmul.f32 %v578_v52, %v578_v52 }
 0x24d   :  { %v211_v28 = vadd.f32 %v801_v51, %v210_v15  ;;  %v428_v29 = vmul.f32 %v803_v21, %v1116_v1  ;;  %v568_v30 = vpop.xlane.xlu2 %567  ;;  %v347_v31 = vmul.f32 %v799_v60, %v346_v24 }
 0x24e   :  { %v569_v33 = vmul.f32 %v568_v30, %v973_v23  ;;  %v805_v34 = vpop.eup %804  ;;  %v661_v62 = vpop.xlane.xlu1 %660 }
 0x24f   :  { %v215_v35 = vsel %vm214_vm11, %v801_v51, %v211_v28  ;;  %v429_v38 = vmul.f32 %v803_v21, %v428_v29  ;;  %v293_v40 = vmul.f32 %v805_v34, %v1120_v7  ;;  %v348_v42 = vmul.f32 %v347_v31, %v1105_v43 }
 0x250   :  { %v220_v39 = vsel %vm217_vm10, %v219_v27, %v215_v35  ;;  %v570_v46 = vsub.f32 %v939_v0, %v569_v33  ;;  %vm298_vm12 = vweird.f32 %v805_v34  ;;  %v458_v51 = vand.u32 2147483648, %v1092_v17 }
 0x251   :  { %v221_v3 = vmul.f32 %v220_v39, %v1090_v11  ;;  %v430_v45 = vmul.f32 0.5, %v429_v38  ;;  %v294_v47 = vsub.f32 1.0, %v293_v40  ;;  %v350_v49 = vsel %vm349_vm7, %v1105_v43, %v348_v42  ;;  %vm299_vm15 = vmor %vm297_vm14, %vm298_vm12 }
 0x252   :  { %v353_v11 = vsel %vm351_vm8, %v352_v25, %v350_v49  ;;  %v588_v55 = vmul.f32 %v570_v46, %v570_v46  ;;  %v579_v59 = vmul.f32 %v578_v52, %v570_v46  ;;  %v459_v12 = vsel %vm457_vm13, %v458_v51, %v456_v26 }
 0x253   :  { %v222_v53 = vadd.f32 %v221_v3, %v1054_v5  ;;  %v431_v54 = vsub.f32 1.5, %v430_v45  ;;  %v295_v56 = vmul.f32 %v805_v34, %v294_v47  ;;  %v375_v58 = vmul.f32 %v374_v48, %v353_v11 }
 0x254   :  { %v590_v61 = vperm.slane %v588_v55, 0  ;;  %v581_v43 = vperm.slane %v579_v59, 0  ;;  %v662_v15 = vmul.f32 %v661_v62, %v973_v23  ;;  %v611_v28 = vperm.slane %v609_v19, 0 }
 0x255   :  { %v432_v60 = vmul.f32 %v803_v21, %v431_v54  ;;  %v296_v63 = vadd.f32 %v805_v34, %v295_v56  ;;  %v376_v5 = vadd.f32 1e-06, %v375_v58 }
 0x256   :  { %591 = vrot.lane.b32.xlu1 %v590_v61, %s914_s22  ;;  %582 = vrot.lane.b32.xlu2 %v581_v43, %s914_s22  ;;  %v663_v25 = vsub.f32 %v951_v4, %v662_v15 }
 0x257   :  { %v433_v6 = vmul.f32 %v432_v60, %v1116_v1  ;;  %v300_v8 = vsel %vm299_vm15, %v805_v34, %v296_v63  ;;  %806 = vrcp.f32 %v376_v5  ;;  %v386_v31 = vand.u32 2147483647, %v376_v5 }
 0x258   :  { %v1166_v7 = vpop.xlane.xlu0 %501  ;;  %v305_v13 = vsel %vm302_vm2, %v304_v57, %v300_v8  ;;  %v694_v30 = vmul.f32 %v663_v25, %v663_v25  ;;  %vm382_vm5 = vweird.f32 %v376_v5 }
 0x259   :  { %v435_v14 = vsel %vm434_vm1, %v1116_v1, %v433_v6  ;;  %v306_v16 = vmul.f32 %v305_v13, %v1095_v22  ;;  %v388_v22 = vand.u32 2147483648, %v376_v5  ;;  %vm387_vm7 = vcmp.eq.f32.partialorder %v386_v31, 8.507059e+37 }
 0x25a   :  { %v438_v18 = vsel %vm436_vm3, %v437_v10, %v435_v14  ;;  %v696_v35 = vperm.slane %v694_v30, 0 }
 0x25b   :  { %v460_v9 = vmul.f32 %v459_v12, %v438_v18  ;;  %v307_v20 = vadd.f32 %v306_v16, %v222_v53  ;;  %v389_v4 = vor.u32 1.1754944e-38, %v388_v22 }
 0x25d   :  { %v461_v21 = vadd.f32 1e-06, %v460_v9  ;;  %v807_v24 = vpop.eup %806 }
 0x25e   :  { %v378_v17 = vmul.f32 %v807_v24, %v376_v5  ;;  %612 = vrot.lane.b32.xlu2 %v611_v28, %s914_s22  ;;  %vm383_vm4 = vweird.f32 %v807_v24 }
 0x25f   :  { %808 = vrcp.f32 %v461_v21  ;;  %vm384_vm6 = vmor %vm382_vm5, %vm383_vm4  ;;  %v473_v40 = vand.u32 2147483648, %v461_v21  ;;  %v471_v3 = vand.u32 2147483647, %v461_v21  ;;  %vm467_vm9 = vweird.f32 %v461_v21 }
 0x260   :  { %v1176_v29 = vpop.xlane.xlu0 %510  ;;  %v379_v1 = vsub.f32 1.0, %v378_v17 }
 0x261   :  { %810 = vrsqrt.f32 %v1176_v29  ;;  %v474_v47 = vor.u32 1.1754944e-38, %v473_v40  ;;  %vm472_vm11 = vcmp.eq.f32.partialorder %v471_v3, 8.507059e+37  ;;  %vm519_vm12 = vcmp.eq.f32.partialorder %v1176_v29, inf }
 0x262   :  { %v380_v27 = vmul.f32 %v807_v24, %v379_v1  ;;  %vm521_vm14 = vcmp.eq.f32.partialorder %v1176_v29, 0.0 }
 0x264   :  { %v381_v33 = vadd.f32 %v807_v24, %v380_v27 }
 0x265   :  { %v809_v32 = vpop.eup %808 }
 0x266   :  { %v463_v34 = vmul.f32 %v809_v32, %v461_v21  ;;  %v385_v37 = vsel %vm384_vm6, %v807_v24, %v381_v33  ;;  %697 = vrot.lane.b32.xlu2 %v696_v35, %s915_s23  ;;  %vm468_vm8 = vweird.f32 %v809_v32 }
 0x267   :  { %v811_v36 = vpop.eup %810  ;;  %v390_v39 = vsel %vm387_vm7, %v389_v4, %v385_v37  ;;  %vm469_vm10 = vmor %vm467_vm9, %vm468_vm8 }
 0x268   :  { %v464_v38 = vsub.f32 1.0, %v463_v34  ;;  %v391_v41 = vmul.f32 %v390_v39, %v1087_v2  ;;  %v513_v44 = vmul.f32 %v811_v36, %v1176_v29 }
 0x26a   :  { %v465_v42 = vmul.f32 %v809_v32, %v464_v38  ;;  %v392_v45 = vadd.f32 %v391_v41, %v307_v20  ;;  %v514_v48 = vmul.f32 %v811_v36, %v513_v44 }
 0x26c   :  { %v466_v46 = vadd.f32 %v809_v32, %v465_v42  ;;  %v515_v54 = vmul.f32 0.5, %v514_v48 }
 0x26e   :  { %v470_v49 = vsel %vm469_vm10, %v809_v32, %v466_v46  ;;  %v516_v55 = vsub.f32 1.5, %v515_v54 }
 0x26f   :  { %v475_v52 = vsel %vm472_vm11, %v474_v47, %v470_v49 }
 0x270   :  { %v532_v53 = vpop.xlane.xlu0 %531  ;;  %v476_v11 = vmul.f32 %v475_v52, %v1112_v50  ;;  %v517_v60 = vmul.f32 %v811_v36, %v516_v55 }
 0x271   :  { %812 = vrsqrt.f32 %v532_v53  ;;  %vm540_vm13 = vcmp.eq.f32.partialorder %v532_v53, inf  ;;  %v543_v10 = vand.u32 2147483648, %v532_v53  ;;  %vm542_vm15 = vcmp.eq.f32.partialorder %v532_v53, 0.0 }
 0x272   :  { %v477_v2 = vadd.f32 %v476_v11, %v392_v45  ;;  %v518_v51 = vmul.f32 %v517_v60, %v1176_v29 }
 0x274   :  { %v520_v62 = vsel %vm519_vm12, %v1176_v29, %v518_v51 }
 0x277   :  { %v813_v56 = vpop.eup %812 }
 0x278   :  { %v534_v58 = vmul.f32 %v813_v56, %v532_v53  ;;  %v653_v59 = vpop.xlane.xlu0 %652 }
 0x279   :  { %v654_v26 = vmul.f32 %v653_v59, %v973_v23  ;;  %v522_v23 = vand.u32 2147483648, %v1176_v29 }
 0x27a   :  { %v535_v61 = vmul.f32 %v813_v56, %v534_v58 }
 0x27b   :  { %v655_v63 = vsub.f32 %v939_v0, %v654_v26  ;;  %v523_v12 = vsel %vm521_vm14, %v522_v23, %v520_v62 }
 0x27c   :  { %v536_v5 = vmul.f32 0.5, %v535_v61 }
 0x27d   :  { %v664_v43 = vmul.f32 %v663_v25, %v655_v63  ;;  %v673_v35 = vmul.f32 %v655_v63, %v655_v63 }
 0x27e   :  { %v537_v57 = vsub.f32 1.5, %v536_v5 }
 0x27f   :  { %v666_v6 = vperm.slane %v664_v43, 0 }
 0x280   :  { %v538_v50 = vmul.f32 %v813_v56, %v537_v57 }
 0x281   :  { %667 = vrot.lane.b32.xlu2 %v666_v6, %s915_s23 }
 0x282   :  { %v539_v8 = vmul.f32 %v538_v50, %v532_v53 }
 0x284   :  { %v541_v0 = vsel %vm540_vm13, %v532_v53, %v539_v8 }
 0x285   :  { %v544_v13 = vsel %vm542_vm15, %v543_v10, %v541_v0 }
 0x286   :  { %v545_v14 = vmul.f32 %v544_v13, %v523_v12 }
 0x288   :  { %v546_v16 = vadd.f32 1e-06, %v545_v14 }
 0x28a   :  { %814 = vrcp.f32 %v546_v16  ;;  %v558_v9 = vand.u32 2147483648, %v546_v16  ;;  %v556_v21 = vand.u32 2147483647, %v546_v16  ;;  %vm552_vm2 = vweird.f32 %v546_v16 }
 0x28c   :  { %v559_v25 = vor.u32 1.1754944e-38, %v558_v9  ;;  %vm557_vm4 = vcmp.eq.f32.partialorder %v556_v21, 8.507059e+37 }
 0x290   :  { %v815_v18 = vpop.eup %814 }
 0x291   :  { %v548_v15 = vmul.f32 %v815_v18, %v546_v16  ;;  %vm553_vm1 = vweird.f32 %v815_v18 }
 0x292   :  { %vm554_vm3 = vmor %vm552_vm2, %vm553_vm1 }
 0x293   :  { %v549_v19 = vsub.f32 1.0, %v548_v15 }
 0x295   :  { %v550_v20 = vmul.f32 %v815_v18, %v549_v19 }
 0x297   :  { %v551_v24 = vadd.f32 %v815_v18, %v550_v20 }
 0x299   :  { %v555_v28 = vsel %vm554_vm3, %v815_v18, %v551_v24  ;;  %v916_v24 = vmov 0.0  }
 0x29a   :  { %v560_v17 = vsel %vm557_vm4, %v559_v25, %v555_v28 }
 0x29b   :  { %v561_v29 = vmul.f32 %v560_v17, %v1166_v7  ;;  %v675_v7 = vperm.slane %v673_v35, 0 }
 0x29d   :  { %v1192_v1 = vadd.f32 %v561_v29, %v477_v2 }
 0x2b0   :  { %v583_v22 = vpop.permute.xlu2 %582 }
 0x2b1   :  { %v585_v30 = vsel %vm62_vm0, %v583_v22, 0.0 }
 0x2b2   :  { %586 = vadd.xlane.f32.xlu0 %v585_v30 }
 0x2b8   :  { %v613_v27 = vpop.permute.xlu2 %612 }
 0x2b9   :  { %v615_v31 = vsel %vm62_vm0, %v613_v27, 0.0 }
 0x2ba   :  { %616 = vadd.xlane.f32.xlu1 %v615_v31 }
 0x2c0   :  { %v698_v32 = vpop.permute.xlu2 %697 }
 0x2c1   :  { %v700_v33 = vsel %vm62_vm0, %v698_v32, 0.0 }
 0x2c2   :  { %701 = vadd.xlane.f32.xlu1 %v700_v33 }
 0x2c8   :  { %v592_v4 = vpop.permute.xlu1 %591 }
 0x2c9   :  { %v594_v34 = vsel %vm62_vm0, %v592_v4, 0.0 }
 0x2ca   :  { %595 = vadd.xlane.f32.xlu0 %v594_v34 }
 0x2db   :  { %v668_v36 = vpop.permute.xlu2 %667 }
 0x2dc   :  { %v670_v37 = vsel %vm62_vm0, %v668_v36, 0.0 }
 0x2de   :  { %676 = vrot.lane.b32.xlu0 %v675_v7, %s915_s23 }
 0x308   :  { %671 = vadd.xlane.f32.xlu0 %v670_v37 }
 0x325   :  { %v587_v40 = vpop.xlane.xlu0 %586 }
 0x32d   :  { %v617_v38 = vpop.xlane.xlu1 %616 }
 0x32e   :  { %816 = vrsqrt.f32 %v617_v38  ;;  %vm625_vm5 = vcmp.eq.f32.partialorder %v617_v38, inf  ;;  %v628_v56 = vand.u32 2147483648, %v617_v38  ;;  %vm627_vm7 = vcmp.eq.f32.partialorder %v617_v38, 0.0 }
 0x334   :  { %v817_v39 = vpop.eup %816 }
 0x335   :  { %v619_v41 = vmul.f32 %v817_v39, %v617_v38  ;;  %v702_v16 = vpop.xlane.xlu1 %701 }
 0x336   :  { %vm710_vm13 = vcmp.eq.f32.partialorder %v702_v16, inf  ;;  %v713_v33 = vand.u32 2147483648, %v702_v16  ;;  %vm712_vm15 = vcmp.eq.f32.partialorder %v702_v16, 0.0 }
 0x337   :  { %v620_v42 = vmul.f32 %v817_v39, %v619_v41 }
 0x339   :  { %v621_v44 = vmul.f32 0.5, %v620_v42 }
 0x33b   :  { %v622_v45 = vsub.f32 1.5, %v621_v44 }
 0x33d   :  { %v596_v3 = vpop.xlane.xlu0 %595  ;;  %v623_v48 = vmul.f32 %v817_v39, %v622_v45 }
 0x33e   :  { %818 = vrsqrt.f32 %v596_v3  ;;  %vm604_vm6 = vcmp.eq.f32.partialorder %v596_v3, inf  ;;  %v607_v58 = vand.u32 2147483648, %v596_v3  ;;  %vm606_vm8 = vcmp.eq.f32.partialorder %v596_v3, 0.0 }
 0x33f   :  { %v624_v53 = vmul.f32 %v623_v48, %v617_v38 }
 0x341   :  { %v626_v2 = vsel %vm625_vm5, %v617_v38, %v624_v53 }
 0x342   :  { %v629_v61 = vsel %vm627_vm7, %v628_v56, %v626_v2 }
 0x344   :  { %v819_v46 = vpop.eup %818 }
 0x345   :  { %v598_v47 = vmul.f32 %v819_v46, %v596_v3 }
 0x347   :  { %v599_v49 = vmul.f32 %v819_v46, %v598_v47 }
 0x349   :  { %v600_v52 = vmul.f32 0.5, %v599_v49 }
 0x34b   :  { %v601_v11 = vsub.f32 1.5, %v600_v52 }
 0x34d   :  { %v602_v54 = vmul.f32 %v819_v46, %v601_v11 }
 0x34f   :  { %v603_v55 = vmul.f32 %v602_v54, %v596_v3 }
 0x350   :  { %v677_v59 = vpop.permute.xlu0 %676 }
 0x351   :  { %v605_v26 = vsel %vm604_vm6, %v596_v3, %v603_v55  ;;  %v679_v60 = vsel %vm62_vm0, %v677_v59, 0.0  ;;  %vm58_vm0 = vcmask 0  }
 0x352   :  { %v608_v63 = vsel %vm606_vm8, %v607_v58, %v605_v26  ;;  %680 = vadd.xlane.f32.xlu2 %v679_v60  ;;  %59 = vst.msk [vmem:[#allocation2] sm:$0x1] %vm58_vm0, %v916_v24 }
 0x353   :  { %v630_v5 = vmul.f32 %v629_v61, %v608_v63 }
 0x355   :  { %v631_v43 = vadd.f32 1e-06, %v630_v5 }
 0x357   :  { %820 = vrcp.f32 %v631_v43  ;;  %v643_v50 = vand.u32 2147483648, %v631_v43  ;;  %v641_v8 = vand.u32 2147483647, %v631_v43  ;;  %vm637_vm10 = vweird.f32 %v631_v43 }
 0x358   :  { %822 = vrsqrt.f32 %v702_v16 }
 0x359   :  { %v644_v10 = vor.u32 1.1754944e-38, %v643_v50  ;;  %vm642_vm12 = vcmp.eq.f32.partialorder %v641_v8, 8.507059e+37  ;;  %v733_v52 = vld [vmem:[#allocation2] sm:$0x1] }
 0x35d   :  { %v821_v51 = vpop.eup %820 }
 0x35e   :  { %v633_v57 = vmul.f32 %v821_v51, %v631_v43  ;;  %vm638_vm9 = vweird.f32 %v821_v51  ;;  %v823_v18 = vpop.eup %822 }
 0x35f   :  { %vm639_vm11 = vmor %vm637_vm10, %vm638_vm9  ;;  %v704_v15 = vmul.f32 %v823_v18, %v702_v16 }
 0x360   :  { %v634_v6 = vsub.f32 1.0, %v633_v57 }
 0x361   :  { %v705_v19 = vmul.f32 %v823_v18, %v704_v15 }
 0x362   :  { %v635_v62 = vmul.f32 %v821_v51, %v634_v6 }
 0x363   :  { %v706_v20 = vmul.f32 0.5, %v705_v19 }
 0x364   :  { %v636_v23 = vadd.f32 %v821_v51, %v635_v62 }
 0x365   :  { %v707_v21 = vsub.f32 1.5, %v706_v20 }
 0x366   :  { %v640_v0 = vsel %vm639_vm11, %v821_v51, %v636_v23 }
 0x367   :  { %v645_v12 = vsel %vm642_vm12, %v644_v10, %v640_v0  ;;  %v708_v17 = vmul.f32 %v823_v18, %v707_v21 }
 0x368   :  { %v646_v13 = vmul.f32 %v645_v12, %v587_v40 }
 0x369   :  { %v709_v30 = vmul.f32 %v708_v17, %v702_v16 }
 0x36a   :  { %v647_v14 = vadd.f32 %v646_v13, %v1192_v1 }
 0x36b   :  { %v711_v31 = vsel %vm710_vm13, %v702_v16, %v709_v30 }
 0x36c   :  { %v714_v35 = vsel %vm712_vm15, %v713_v33, %v711_v31 }
 0x37b   :  { %v672_v47 = vpop.xlane.xlu0 %671 }
 0x3c5   :  { %v681_v9 = vpop.xlane.xlu2 %680 }
 0x3c6   :  { %824 = vrsqrt.f32 %v681_v9  ;;  %vm689_vm14 = vcmp.eq.f32.partialorder %v681_v9, inf  ;;  %v692_v4 = vand.u32 2147483648, %v681_v9  ;;  %vm691_vm1 = vcmp.eq.f32.partialorder %v681_v9, 0.0 }
 0x3cc   :  { %v825_v25 = vpop.eup %824 }
 0x3cd   :  { %v683_v28 = vmul.f32 %v825_v25, %v681_v9 }
 0x3cf   :  { %v684_v29 = vmul.f32 %v825_v25, %v683_v28 }
 0x3d1   :  { %v685_v22 = vmul.f32 0.5, %v684_v29 }
 0x3d3   :  { %v686_v1 = vsub.f32 1.5, %v685_v22 }
 0x3d5   :  { %v687_v27 = vmul.f32 %v825_v25, %v686_v1 }
 0x3d7   :  { %v688_v32 = vmul.f32 %v687_v27, %v681_v9 }
 0x3d9   :  { %v690_v34 = vsel %vm689_vm14, %v681_v9, %v688_v32 }
 0x3da   :  { %v693_v7 = vsel %vm691_vm1, %v692_v4, %v690_v34 }
 0x3db   :  { %v715_v36 = vmul.f32 %v714_v35, %v693_v7 }
 0x3dd   :  { %v716_v37 = vadd.f32 1e-06, %v715_v36 }
 0x3df   :  { %826 = vrcp.f32 %v716_v37  ;;  %v728_v41 = vand.u32 2147483648, %v716_v37  ;;  %v726_v3 = vand.u32 2147483647, %v716_v37  ;;  %vm722_vm3 = vweird.f32 %v716_v37 }
 0x3e1   :  { %v729_v45 = vor.u32 1.1754944e-38, %v728_v41  ;;  %vm727_vm5 = vcmp.eq.f32.partialorder %v726_v3, 8.507059e+37 }
 0x3e5   :  { %v827_v38 = vpop.eup %826 }
 0x3e6   :  { %v718_v39 = vmul.f32 %v827_v38, %v716_v37  ;;  %vm723_vm2 = vweird.f32 %v827_v38 }
 0x3e7   :  { %vm724_vm4 = vmor %vm722_vm3, %vm723_vm2 }
 0x3e8   :  { %v719_v40 = vsub.f32 1.0, %v718_v39 }
 0x3ea   :  { %v720_v42 = vmul.f32 %v827_v38, %v719_v40 }
 0x3ec   :  { %v721_v44 = vadd.f32 %v827_v38, %v720_v42 }
 0x3ee   :  { %v725_v46 = vsel %vm724_vm4, %v827_v38, %v721_v44 }
 0x3ef   :  { %v730_v48 = vsel %vm727_vm5, %v729_v45, %v725_v46 }
 0x3f0   :  { %v731_v49 = vmul.f32 %v730_v48, %v672_v47 }
 0x3f2   :  { %v732_v53 = vadd.f32 %v731_v49, %v647_v14 }
 0x3f4   :  { %v736_v11 = vadd.f32 %v733_v52, %v732_v53 }
 0x3f6   :  { %738 = vst.msk [vmem:[#allocation2] sm:$0x1] %vm58_vm0, %v736_v11 }
 0x3fd   :  { %v742_v54 = vld [vmem:[#allocation2] sm:$0x1] }
 0x3fe   :  { %743 = vst.msk [vmem:[#allocation8] sm:$0x1] %vm58_vm0, %v742_v54 }
 0x3ff   :  { %754 = dma.vmem_to_hbm [thread:$0]  %s750_s25, 16, %s752_s28, [#allocation5]  }
 0x400   :  { %904 = dma.done.wait [#allocation5], 16  }
 0x401   :  { %905 = vsyncadd [#allocation5], 4294967280 }
 0x402   :  { %759 = vsyncpa [#allocation4], 1 }
 0x403   :  { %760 = vsyncpa [#allocation7], 1 }
 0x404   :  { %761 = vsyncpa [#allocation5], 1 }

</bundles_post_ra>
